<compile_context>
chip_gen: v6e
topology: v6e:2x2x1
jax: 0.10.0
libtpu: 0.0.40
codegen_flags: <defaults>
</compile_context>

<pallas_src>
import functools
import math

import jax
import jax.numpy as jnp
from jax import lax
from jax.experimental import pallas as pl
from jax.experimental.pallas import tpu as pltpu

# ----------------------------- configuration --------------------------------

CFG = dict(vocab=100, max_pos=32, hidden=64, n_heads=2, ffn=128, n_layers=2)
LORA_R, LORA_ALPHA = 8, 16
LORA_SCALE = LORA_ALPHA / LORA_R
TASK_WEIGHTS = (0.7, 0.1, 0.2)                  # topic, ner, sentiment
N_TOPIC, N_NER, N_SENT = 5, 5, 3
HEAD_PAD = 128                                  # lane-dense fused head width
TOPIC_OFF, NER_OFF, SENT_OFF = 0, N_TOPIC, N_TOPIC + N_NER   # 0, 5, 10


# ------------------------------- Pallas kernel -------------------------------

def _layernorm(x, g, b, eps=1e-12):
    mu = jnp.mean(x, axis=-1, keepdims=True)
    var = jnp.mean((x - mu) ** 2, axis=-1, keepdims=True)
    return (x - mu) * lax.rsqrt(var + eps) * g + b


def fused_model_kernel(x_emb_ref, mask_ref, eg_ref, eb_ref,
                       wqkv_ref, bqkv_ref, wo_ref, bo_ref,
                       ln1g_ref, ln1b_ref, w1_ref, b1_ref,
                       w2_ref, b2_ref, ln2g_ref, ln2b_ref,
                       wh_ref, bh_ref, lab_ref,
                       logits_ref, loss_ref, ctx_ref,
                       *, n_layers, n_heads, head_dim, batch, seq, weights):
    """Whole model in one invocation: embedding LN -> L encoder layers ->
    fused classifier heads -> weighted CE loss.  Everything VMEM-resident."""
    H = n_heads * head_dim
    N = batch * seq
    scale = 1.0 / math.sqrt(head_dim)

    # Embedding LayerNorm seeds the resident activation slab  [B*S, H].
    x = _layernorm(x_emb_ref[...], eg_ref[...], eb_ref[...])
    bias = mask_ref[...]                                  # [B, 1, S] additive mask

    for l in range(n_layers):                             # static loop, weights resident
        # fused q/k/v projection on the whole [B*S, H] slab (LoRA folded in wrapper)
        qkv = jnp.dot(x, wqkv_ref[l], preferred_element_type=jnp.float32) + bqkv_ref[l]
        q = qkv[:, 0:H].reshape(batch, seq, H)
        k = qkv[:, H:2 * H].reshape(batch, seq, H)
        v = qkv[:, 2 * H:3 * H].reshape(batch, seq, H)

        for h in range(n_heads):                          # static head loop (n_heads=2)
            c0 = h * head_dim
            qh = q[:, :, c0:c0 + head_dim]
            kh = k[:, :, c0:c0 + head_dim]
            vh = v[:, :, c0:c0 + head_dim]
            s = jnp.einsum('bqd,bkd->bqk', qh, kh,
                           preferred_element_type=jnp.float32) * scale + bias
            m = jnp.max(s, axis=-1, keepdims=True)
            p = jnp.exp(s - m)
            p = p * pl.reciprocal(jnp.sum(p, axis=-1, keepdims=True), approx=True)
            ch = jnp.einsum('bqk,bkd->bqd', p, vh,
                            preferred_element_type=jnp.float32)
            # write head output straight into the ctx scratch (no concatenate)
            ctx_ref[:, c0:c0 + head_dim] = ch.reshape(N, head_dim)

        attn = jnp.dot(ctx_ref[...], wo_ref[l],
                       preferred_element_type=jnp.float32) + bo_ref[l]
        x = _layernorm(attn + x, ln1g_ref[l], ln1b_ref[l])

        ff = jnp.dot(x, w1_ref[l], preferred_element_type=jnp.float32) + b1_ref[l]
        # TODO(synk): DistilBERT uses exact (erf) GELU; tanh approximation used here.
        ff = jax.nn.gelu(ff, approximate=True)
        ff = jnp.dot(ff, w2_ref[l], preferred_element_type=jnp.float32) + b2_ref[l]
        x = _layernorm(ff + x, ln2g_ref[l], ln2b_ref[l])

    # ---- epilogue: fused lane-dense classifier heads + weighted CE loss ----
    logits = jnp.dot(x, wh_ref[...], preferred_element_type=jnp.float32) + bh_ref[...]
    logits_ref[...] = logits                              # unmasked 128-lane store

    col = lax.broadcasted_iota(jnp.int32, logits.shape, 1)
    labels = lab_ref[...]                                 # [N, 3] int32, -100 = ignore

    def masked_ce(task_idx, lo, hi):
        lab = labels[:, task_idx:task_idx + 1]            # [N, 1]
        lane_mask = (col >= lo) & (col < hi)
        ml = jnp.where(lane_mask, logits, -1e30)
        m = jnp.max(ml, axis=-1, keepdims=True)
        lse = m + jnp.log(jnp.sum(jnp.where(lane_mask, jnp.exp(ml - m), 0.0),
                                  axis=-1, keepdims=True))
        picked = jnp.sum(jnp.where(col == lab + lo, logits, 0.0),
                         axis=-1, keepdims=True)
        valid = (lab != -100).astype(jnp.float32)
        total = jnp.sum((lse - picked) * valid, axis=0, keepdims=True)   # [1, 1]
        count = jnp.sum(valid, axis=0, keepdims=True)                    # [1, 1]
        return total / jnp.maximum(count, 1.0)

    t_loss = masked_ce(0, TOPIC_OFF, TOPIC_OFF + N_TOPIC)
    n_loss = masked_ce(1, NER_OFF, NER_OFF + N_NER)
    s_loss = masked_ce(2, SENT_OFF, SENT_OFF + N_SENT)
    loss_ref[...] = weights[0] * t_loss + weights[1] * n_loss + weights[2] * s_loss


# ----------------------------- Pallas wrapper --------------------------------

def _fused_model_call(prep, x_emb, mask_bias, labels3, batch, seq):
    H, F, L = CFG["hidden"], CFG["ffn"], CFG["n_layers"]
    nH = CFG["n_heads"]
    dh = H // nH
    N = batch * seq

    kernel = functools.partial(
        fused_model_kernel, n_layers=L, n_heads=nH, head_dim=dh,
        batch=batch, seq=seq, weights=TASK_WEIGHTS)

    operands = (x_emb, mask_bias,
                prep["emb_ln_g"], prep["emb_ln_b"],
                prep["Wqkv"], prep["bqkv"], prep["Wo"], prep["bo"],
                prep["ln1_g"], prep["ln1_b"], prep["W1"], prep["b1"],
                prep["W2"], prep["b2"], prep["ln2_g"], prep["ln2_b"],
                prep["w_head"], prep["b_head"], labels3)

    vmem = pl.BlockSpec(memory_space=pltpu.MemorySpace.VMEM)
    return pl.pallas_call(
        kernel,
        out_shape=(jax.ShapeDtypeStruct((N, HEAD_PAD), jnp.float32),   # fused logits
                   jax.ShapeDtypeStruct((1, 1), jnp.float32)),         # weighted loss
        in_specs=[vmem] * len(operands),
        out_specs=(vmem, vmem),
        scratch_shapes=[pltpu.VMEM((N, H), jnp.float32)],              # ctx scratch
    )(*operands)


# ----------------------------- model definition ------------------------------

def _xavier(key, shape):
    fan_in, fan_out = shape[0], shape[1]
    bound = math.sqrt(6.0 / (fan_in + fan_out))
    return jax.random.uniform(key, shape, jnp.float32, -bound, bound)


def init_params(key):
    H, F = CFG["hidden"], CFG["ffn"]
    keys = iter(jax.random.split(key, 256))
    p = {
        "word_emb": jax.random.normal(next(keys), (CFG["vocab"], H), jnp.float32) * 0.02,
        "pos_emb": jax.random.normal(next(keys), (CFG["max_pos"], H), jnp.float32) * 0.02,
        "emb_ln_g": jnp.ones((H,), jnp.float32),
        "emb_ln_b": jnp.zeros((H,), jnp.float32),
        "layers": [],
    }
    for _ in range(CFG["n_layers"]):
        layer = {}
        for name in ("q", "k", "v", "o"):
            layer[f"W{name}"] = _xavier(next(keys), (H, H))
            layer[f"b{name}"] = jnp.zeros((H,), jnp.float32)
        for name in ("q", "k", "v"):  # LoRA on q_lin, k_lin, v_lin
            layer[f"A{name}"] = _xavier(next(keys), (H, LORA_R))
            layer[f"B{name}"] = _xavier(next(keys), (LORA_R, H))
        layer["ln1_g"] = jnp.ones((H,), jnp.float32)
        layer["ln1_b"] = jnp.zeros((H,), jnp.float32)
        layer["W1"] = _xavier(next(keys), (H, F))
        layer["b1"] = jnp.zeros((F,), jnp.float32)
        layer["W2"] = _xavier(next(keys), (F, H))
        layer["b2"] = jnp.zeros((H,), jnp.float32)
        layer["ln2_g"] = jnp.ones((H,), jnp.float32)
        layer["ln2_b"] = jnp.zeros((H,), jnp.float32)
        p["layers"].append(layer)
    p["Wtopic"] = _xavier(next(keys), (H, N_TOPIC))
    p["btopic"] = jnp.zeros((N_TOPIC,), jnp.float32)
    p["Wner"] = _xavier(next(keys), (H, N_NER))
    p["bner"] = jnp.zeros((N_NER,), jnp.float32)
    p["Wsent"] = _xavier(next(keys), (H, N_SENT))
    p["bsent"] = jnp.zeros((N_SENT,), jnp.float32)
    return p


def prepare_weights(params):
    """One-time weight prep (hoisted out of the per-call path):
    fold LoRA into dense q/k/v, fuse q/k/v, stack per-layer weights along a
    leading [n_layers] axis, and scatter the 3 classifier heads into one
    lane-dense [H, 128] matrix."""
    H = CFG["hidden"]
    stack = {k: [] for k in ("Wqkv", "bqkv", "Wo", "bo", "ln1_g", "ln1_b",
                             "W1", "b1", "W2", "b2", "ln2_g", "ln2_b")}
    for L in params["layers"]:
        wq = L["Wq"] + LORA_SCALE * (L["Aq"] @ L["Bq"])
        wk = L["Wk"] + LORA_SCALE * (L["Ak"] @ L["Bk"])
        wv = L["Wv"] + LORA_SCALE * (L["Av"] @ L["Bv"])
        stack["Wqkv"].append(jnp.concatenate([wq, wk, wv], axis=1))
        stack["bqkv"].append(jnp.concatenate([L["bq"], L["bk"], L["bv"]])[None, :])
        stack["Wo"].append(L["Wo"])
        stack["bo"].append(L["bo"][None, :])
        stack["ln1_g"].append(L["ln1_g"][None, :])
        stack["ln1_b"].append(L["ln1_b"][None, :])
        stack["W1"].append(L["W1"])
        stack["b1"].append(L["b1"][None, :])
        stack["W2"].append(L["W2"])
        stack["b2"].append(L["b2"][None, :])
        stack["ln2_g"].append(L["ln2_g"][None, :])
        stack["ln2_b"].append(L["ln2_b"][None, :])
    prep = {k: jnp.stack(v, axis=0) for k, v in stack.items()}

    prep["word_emb"] = params["word_emb"]
    prep["pos_emb"] = params["pos_emb"]
    prep["emb_ln_g"] = params["emb_ln_g"].reshape(1, H)
    prep["emb_ln_b"] = params["emb_ln_b"].reshape(1, H)

    w_head = jnp.zeros((H, HEAD_PAD), jnp.float32)
    w_head = w_head.at[:, TOPIC_OFF:TOPIC_OFF + N_TOPIC].set(params["Wtopic"])
    w_head = w_head.at[:, NER_OFF:NER_OFF + N_NER].set(params["Wner"])
    w_head = w_head.at[:, SENT_OFF:SENT_OFF + N_SENT].set(params["Wsent"])
    b_head = jnp.zeros((1, HEAD_PAD), jnp.float32)
    b_head = b_head.at[:, TOPIC_OFF:TOPIC_OFF + N_TOPIC].set(params["btopic"][None, :])
    b_head = b_head.at[:, NER_OFF:NER_OFF + N_NER].set(params["bner"][None, :])
    b_head = b_head.at[:, SENT_OFF:SENT_OFF + N_SENT].set(params["bsent"][None, :])
    prep["w_head"] = w_head
    prep["b_head"] = b_head
    return prep


@jax.jit
def _forward_impl(prepared, input_ids, attention_mask, t_lab, n_lab, s_lab):
    """Jitted per-call path: embedding gather + mask bias + label packing +
    the single fused Pallas kernel + output slicing."""
    B, S = input_ids.shape
    H = CFG["hidden"]

    x_emb = (prepared["word_emb"][input_ids]
             + prepared["pos_emb"][:S][None, :, :]).reshape(B * S, H)
    mask_bias = ((attention_mask.astype(jnp.float32) - 1.0) * 1e9).reshape(B, 1, S)

    # sentiment label applies to the CLS (first) token of each sequence
    s_full = jnp.full((B, S), -100, jnp.int32).at[:, 0].set(s_lab.astype(jnp.int32))
    labels3 = jnp.stack([t_lab.reshape(-1).astype(jnp.int32),
                         n_lab.reshape(-1).astype(jnp.int32),
                         s_full.reshape(-1)], axis=1)                  # [B*S, 3]

    logits_all, loss2d = _fused_model_call(prepared, x_emb, mask_bias, labels3, B, S)

    topic_logits = logits_all[:, TOPIC_OFF:TOPIC_OFF + N_TOPIC].reshape(B, S, N_TOPIC)
    ner_logits = logits_all[:, NER_OFF:NER_OFF + N_NER].reshape(B, S, N_NER)
    sentiment_logits = logits_all.reshape(B, S, HEAD_PAD)[:, 0,
                                                          SENT_OFF:SENT_OFF + N_SENT]
    return topic_logits, ner_logits, sentiment_logits, loss2d


def multi_task_forward(prepared, input_ids, attention_mask,
                       topic_labels=None, ner_labels=None, sentiment=None):
    B, S = input_ids.shape
    have_labels = (topic_labels is not None and ner_labels is not None
                   and sentiment is not None)
    if have_labels:
        t_lab, n_lab, s_lab = topic_labels, ner_labels, sentiment
    else:
        t_lab = jnp.full((B, S), -100, jnp.int32)
        n_lab = jnp.full((B, S), -100, jnp.int32)
        s_lab = jnp.full((B,), -100, jnp.int32)

    topic_logits, ner_logits, sentiment_logits, loss2d = _forward_impl(
        prepared, input_ids, attention_mask, t_lab, n_lab, s_lab)

    return {
        "loss": loss2d[0, 0] if have_labels else None,
        "topic_logits": topic_logits,
        "ner_logits": ner_logits,
        "sentiment_logits": sentiment_logits,
    }


# --------------------------------- main ---------------------------------------

if __name__ == "__main__":
    key = jax.random.PRNGKey(0)
    k_param, k_ids, k_top, k_ner, k_sent = jax.random.split(key, 5)

    params = init_params(k_param)
    prepared = prepare_weights(params)          # one-time LoRA fold / stacking

    B, S = 2, 8
    input_ids = jax.random.randint(k_ids, (B, S), 0, CFG["vocab"], dtype=jnp.int32)
    attention_mask = jnp.ones((B, S), jnp.int32).at[1, 6:].set(0)  # pad last 2 of row 1

    topic_labels = jax.random.randint(k_top, (B, S), 0, N_TOPIC, dtype=jnp.int32)
    topic_labels = topic_labels.at[1, 6:].set(-100)                # ignore padded tokens
    ner_labels = jax.random.randint(k_ner, (B, S), 0, N_NER, dtype=jnp.int32)
    ner_labels = ner_labels.at[1, 6:].set(-100)
    sentiment = jax.random.randint(k_sent, (B,), 0, N_SENT, dtype=jnp.int32)

    out = multi_task_forward(prepared, input_ids, attention_mask,
                             topic_labels, ner_labels, sentiment)
    jax.block_until_ready(out)

    loss = float(out["loss"])
    assert out["topic_logits"].shape == (B, S, N_TOPIC)
    assert out["ner_logits"].shape == (B, S, N_NER)
    assert out["sentiment_logits"].shape == (B, N_SENT)
    assert math.isfinite(loss)

    print("KERNEL_OK")
</pallas_src>

<mosaic_0001>
module attributes {stable_mosaic.version = 11 : i64} {
  func.func @fused_model_kernel(%arg0: memref<16x64xf32, #tpu.memory_space<vmem>>, %arg1: memref<2x1x8xf32, #tpu.memory_space<vmem>>, %arg2: memref<1x64xf32, #tpu.memory_space<vmem>>, %arg3: memref<1x64xf32, #tpu.memory_space<vmem>>, %arg4: memref<2x64x192xf32, #tpu.memory_space<vmem>>, %arg5: memref<2x1x192xf32, #tpu.memory_space<vmem>>, %arg6: memref<2x64x64xf32, #tpu.memory_space<vmem>>, %arg7: memref<2x1x64xf32, #tpu.memory_space<vmem>>, %arg8: memref<2x1x64xf32, #tpu.memory_space<vmem>>, %arg9: memref<2x1x64xf32, #tpu.memory_space<vmem>>, %arg10: memref<2x64x128xf32, #tpu.memory_space<vmem>>, %arg11: memref<2x1x128xf32, #tpu.memory_space<vmem>>, %arg12: memref<2x128x64xf32, #tpu.memory_space<vmem>>, %arg13: memref<2x1x64xf32, #tpu.memory_space<vmem>>, %arg14: memref<2x1x64xf32, #tpu.memory_space<vmem>>, %arg15: memref<2x1x64xf32, #tpu.memory_space<vmem>>, %arg16: memref<64x128xf32, #tpu.memory_space<vmem>>, %arg17: memref<1x128xf32, #tpu.memory_space<vmem>>, %arg18: memref<16x3xi32, #tpu.memory_space<vmem>>, %arg19: memref<16x128xf32, #tpu.memory_space<vmem>>, %arg20: memref<1x1xf32, #tpu.memory_space<vmem>>, %arg21: memref<16x64xf32, #tpu.memory_space<vmem>>) attributes {dimension_semantics = [], scalar_prefetch = 0 : i64, scratch_operands = 1 : i64, tpu.core_type = #tpu.core_type<tc>} {
    %c0 = arith.constant 0 : index
    %c0_0 = arith.constant 0 : index
    %0 = vector.load %arg0[%c0, %c0_0] : memref<16x64xf32, #tpu.memory_space<vmem>>, vector<16x64xf32>
    %c0_1 = arith.constant 0 : index
    %c0_2 = arith.constant 0 : index
    %1 = vector.load %arg2[%c0_1, %c0_2] : memref<1x64xf32, #tpu.memory_space<vmem>>, vector<1x64xf32>
    %c0_3 = arith.constant 0 : index
    %c0_4 = arith.constant 0 : index
    %2 = vector.load %arg3[%c0_3, %c0_4] : memref<1x64xf32, #tpu.memory_space<vmem>>, vector<1x64xf32>
    %cst = arith.constant dense<0.000000e+00> : vector<16xf32>
    %3 = vector.multi_reduction <add>, %0, %cst [1] : vector<16x64xf32> to vector<16xf32>
    %4 = vector.shape_cast %3 : vector<16xf32> to vector<16x1xf32>
    %cst_5 = arith.constant 6.400000e+01 : f32
    %5 = vector.broadcast %cst_5 : f32 to vector<16x1xf32>
    %6 = arith.divf %4, %5 : vector<16x1xf32>
    %7 = vector.broadcast %6 : vector<16x1xf32> to vector<16x64xf32>
    %8 = arith.subf %0, %7 : vector<16x64xf32>
    %9 = arith.mulf %8, %8 : vector<16x64xf32>
    %cst_6 = arith.constant dense<0.000000e+00> : vector<16xf32>
    %10 = vector.multi_reduction <add>, %9, %cst_6 [1] : vector<16x64xf32> to vector<16xf32>
    %11 = vector.shape_cast %10 : vector<16xf32> to vector<16x1xf32>
    %cst_7 = arith.constant 6.400000e+01 : f32
    %12 = vector.broadcast %cst_7 : f32 to vector<16x1xf32>
    %13 = arith.divf %11, %12 : vector<16x1xf32>
    %14 = vector.broadcast %6 : vector<16x1xf32> to vector<16x64xf32>
    %15 = arith.subf %0, %14 : vector<16x64xf32>
    %cst_8 = arith.constant 9.99999996E-13 : f32
    %16 = vector.broadcast %cst_8 : f32 to vector<16x1xf32>
    %17 = arith.addf %13, %16 : vector<16x1xf32>
    %18 = math.rsqrt %17 : vector<16x1xf32>
    %19 = vector.broadcast %18 : vector<16x1xf32> to vector<16x64xf32>
    %20 = arith.mulf %15, %19 : vector<16x64xf32>
    %21 = vector.broadcast %1 : vector<1x64xf32> to vector<16x64xf32>
    %22 = arith.mulf %20, %21 : vector<16x64xf32>
    %23 = vector.broadcast %2 : vector<1x64xf32> to vector<16x64xf32>
    %24 = arith.addf %22, %23 : vector<16x64xf32>
    %c0_9 = arith.constant 0 : index
    %c0_10 = arith.constant 0 : index
    %c0_11 = arith.constant 0 : index
    %25 = vector.load %arg1[%c0_9, %c0_10, %c0_11] : memref<2x1x8xf32, #tpu.memory_space<vmem>>, vector<2x1x8xf32>
    %c0_12 = arith.constant 0 : index
    %c0_13 = arith.constant 0 : index
    %c0_14 = arith.constant 0 : index
    %26 = vector.load %arg4[%c0_12, %c0_13, %c0_14] : memref<2x64x192xf32, #tpu.memory_space<vmem>>, vector<1x64x192xf32>
    %27 = vector.shape_cast %26 : vector<1x64x192xf32> to vector<64x192xf32>
    %cst_15 = arith.constant dense<0.000000e+00> : vector<16x192xf32>
    %28 = tpu.matmul %24, %27, %cst_15 {dimension_numbers = #tpu.dot_dimension_numbers<[1], [0], [0], [1], [0, 0, 1, 1], [], []>} : vector<16x64xf32>, vector<64x192xf32>, vector<16x192xf32> -> vector<16x192xf32>
    %c0_16 = arith.constant 0 : index
    %c0_17 = arith.constant 0 : index
    %c0_18 = arith.constant 0 : index
    %29 = vector.load %arg5[%c0_16, %c0_17, %c0_18] : memref<2x1x192xf32, #tpu.memory_space<vmem>>, vector<1x1x192xf32>
    %30 = vector.shape_cast %29 : vector<1x1x192xf32> to vector<1x192xf32>
    %31 = vector.broadcast %30 : vector<1x192xf32> to vector<16x192xf32>
    %32 = arith.addf %28, %31 : vector<16x192xf32>
    %33 = vector.extract_strided_slice %32 {offsets = [0, 0], sizes = [16, 64], strides = [1, 1]} : vector<16x192xf32> to vector<16x64xf32>
    %34 = vector.shape_cast %33 : vector<16x64xf32> to vector<2x8x64xf32>
    %35 = vector.extract_strided_slice %32 {offsets = [0, 64], sizes = [16, 64], strides = [1, 1]} : vector<16x192xf32> to vector<16x64xf32>
    %36 = vector.shape_cast %35 : vector<16x64xf32> to vector<2x8x64xf32>
    %37 = vector.extract_strided_slice %32 {offsets = [0, 128], sizes = [16, 64], strides = [1, 1]} : vector<16x192xf32> to vector<16x64xf32>
    %38 = vector.shape_cast %37 : vector<16x64xf32> to vector<2x8x64xf32>
    %39 = vector.extract_strided_slice %34 {offsets = [0, 0, 0], sizes = [2, 8, 32], strides = [1, 1, 1]} : vector<2x8x64xf32> to vector<2x8x32xf32>
    %40 = vector.extract_strided_slice %36 {offsets = [0, 0, 0], sizes = [2, 8, 32], strides = [1, 1, 1]} : vector<2x8x64xf32> to vector<2x8x32xf32>
    %41 = vector.extract_strided_slice %38 {offsets = [0, 0, 0], sizes = [2, 8, 32], strides = [1, 1, 1]} : vector<2x8x64xf32> to vector<2x8x32xf32>
    "tpu.trace_start"() <{level = 10 : i32, message = "bqd,bkd->bqk"}> : () -> ()
    %cst_19 = arith.constant dense<0.000000e+00> : vector<2x8x8xf32>
    %42 = tpu.matmul %39, %40, %cst_19 {dimension_numbers = #tpu.dot_dimension_numbers<[2], [2], [1], [1], [0, 0, 0, 1, 1, 1], [0], [0]>} : vector<2x8x32xf32>, vector<2x8x32xf32>, vector<2x8x8xf32> -> vector<2x8x8xf32>
    "tpu.trace_stop"() : () -> ()
    %cst_20 = arith.constant 0.176776692 : f32
    %43 = vector.broadcast %cst_20 : f32 to vector<2x8x8xf32>
    %44 = arith.mulf %42, %43 : vector<2x8x8xf32>
    %45 = vector.broadcast %25 : vector<2x1x8xf32> to vector<2x8x8xf32>
    %46 = arith.addf %44, %45 : vector<2x8x8xf32>
    %cst_21 = arith.constant dense<0xFF800000> : vector<2x8xf32>
    %47 = vector.multi_reduction <maximumf>, %46, %cst_21 [2] : vector<2x8x8xf32> to vector<2x8xf32>
    %48 = vector.shape_cast %47 : vector<2x8xf32> to vector<2x8x1xf32>
    %49 = vector.broadcast %48 : vector<2x8x1xf32> to vector<2x8x8xf32>
    %50 = arith.subf %46, %49 : vector<2x8x8xf32>
    %51 = math.exp %50 : vector<2x8x8xf32>
    %cst_22 = arith.constant dense<0.000000e+00> : vector<2x8xf32>
    %52 = vector.multi_reduction <add>, %51, %cst_22 [2] : vector<2x8x8xf32> to vector<2x8xf32>
    %53 = vector.shape_cast %52 : vector<2x8xf32> to vector<2x8x1xf32>
    %54 = tpu.reciprocal %53 {approx = true} : vector<2x8x1xf32> -> vector<2x8x1xf32>
    %55 = vector.broadcast %54 : vector<2x8x1xf32> to vector<2x8x8xf32>
    %56 = arith.mulf %51, %55 : vector<2x8x8xf32>
    "tpu.trace_start"() <{level = 10 : i32, message = "bqk,bkd->bqd"}> : () -> ()
    %cst_23 = arith.constant dense<0.000000e+00> : vector<2x8x32xf32>
    %57 = tpu.matmul %56, %41, %cst_23 {dimension_numbers = #tpu.dot_dimension_numbers<[2], [1], [1], [2], [0, 0, 0, 1, 1, 2], [0], [0]>} : vector<2x8x8xf32>, vector<2x8x32xf32>, vector<2x8x32xf32> -> vector<2x8x32xf32>
    "tpu.trace_stop"() : () -> ()
    %58 = vector.shape_cast %57 : vector<2x8x32xf32> to vector<16x32xf32>
    %c0_24 = arith.constant 0 : index
    %c0_25 = arith.constant 0 : index
    %59 = vector.load %arg21[%c0_24, %c0_25] : memref<16x64xf32, #tpu.memory_space<vmem>>, vector<16x32xf32>
    tpu.vector_store %arg21[%c0_24, %c0_25], %58 {strides = array<i32>} : memref<16x64xf32, #tpu.memory_space<vmem>>, vector<16x32xf32>,
    %60 = vector.extract_strided_slice %34 {offsets = [0, 0, 32], sizes = [2, 8, 32], strides = [1, 1, 1]} : vector<2x8x64xf32> to vector<2x8x32xf32>
    %61 = vector.extract_strided_slice %36 {offsets = [0, 0, 32], sizes = [2, 8, 32], strides = [1, 1, 1]} : vector<2x8x64xf32> to vector<2x8x32xf32>
    %62 = vector.extract_strided_slice %38 {offsets = [0, 0, 32], sizes = [2, 8, 32], strides = [1, 1, 1]} : vector<2x8x64xf32> to vector<2x8x32xf32>
    "tpu.trace_start"() <{level = 10 : i32, message = "bqd,bkd->bqk"}> : () -> ()
    %cst_26 = arith.constant dense<0.000000e+00> : vector<2x8x8xf32>
    %63 = tpu.matmul %60, %61, %cst_26 {dimension_numbers = #tpu.dot_dimension_numbers<[2], [2], [1], [1], [0, 0, 0, 1, 1, 1], [0], [0]>} : vector<2x8x32xf32>, vector<2x8x32xf32>, vector<2x8x8xf32> -> vector<2x8x8xf32>
    "tpu.trace_stop"() : () -> ()
    %cst_27 = arith.constant 0.176776692 : f32
    %64 = vector.broadcast %cst_27 : f32 to vector<2x8x8xf32>
    %65 = arith.mulf %63, %64 : vector<2x8x8xf32>
    %66 = vector.broadcast %25 : vector<2x1x8xf32> to vector<2x8x8xf32>
    %67 = arith.addf %65, %66 : vector<2x8x8xf32>
    %cst_28 = arith.constant dense<0xFF800000> : vector<2x8xf32>
    %68 = vector.multi_reduction <maximumf>, %67, %cst_28 [2] : vector<2x8x8xf32> to vector<2x8xf32>
    %69 = vector.shape_cast %68 : vector<2x8xf32> to vector<2x8x1xf32>
    %70 = vector.broadcast %69 : vector<2x8x1xf32> to vector<2x8x8xf32>
    %71 = arith.subf %67, %70 : vector<2x8x8xf32>
    %72 = math.exp %71 : vector<2x8x8xf32>
    %cst_29 = arith.constant dense<0.000000e+00> : vector<2x8xf32>
    %73 = vector.multi_reduction <add>, %72, %cst_29 [2] : vector<2x8x8xf32> to vector<2x8xf32>
    %74 = vector.shape_cast %73 : vector<2x8xf32> to vector<2x8x1xf32>
    %75 = tpu.reciprocal %74 {approx = true} : vector<2x8x1xf32> -> vector<2x8x1xf32>
    %76 = vector.broadcast %75 : vector<2x8x1xf32> to vector<2x8x8xf32>
    %77 = arith.mulf %72, %76 : vector<2x8x8xf32>
    "tpu.trace_start"() <{level = 10 : i32, message = "bqk,bkd->bqd"}> : () -> ()
    %cst_30 = arith.constant dense<0.000000e+00> : vector<2x8x32xf32>
    %78 = tpu.matmul %77, %62, %cst_30 {dimension_numbers = #tpu.dot_dimension_numbers<[2], [1], [1], [2], [0, 0, 0, 1, 1, 2], [0], [0]>} : vector<2x8x8xf32>, vector<2x8x32xf32>, vector<2x8x32xf32> -> vector<2x8x32xf32>
    "tpu.trace_stop"() : () -> ()
    %79 = vector.shape_cast %78 : vector<2x8x32xf32> to vector<16x32xf32>
    %c0_31 = arith.constant 0 : index
    %c32 = arith.constant 32 : index
    %80 = vector.load %arg21[%c0_31, %c32] : memref<16x64xf32, #tpu.memory_space<vmem>>, vector<16x32xf32>
    tpu.vector_store %arg21[%c0_31, %c32], %79 {strides = array<i32>} : memref<16x64xf32, #tpu.memory_space<vmem>>, vector<16x32xf32>,
    %c0_32 = arith.constant 0 : index
    %c0_33 = arith.constant 0 : index
    %81 = vector.load %arg21[%c0_32, %c0_33] : memref<16x64xf32, #tpu.memory_space<vmem>>, vector<16x64xf32>
    %c0_34 = arith.constant 0 : index
    %c0_35 = arith.constant 0 : index
    %c0_36 = arith.constant 0 : index
    %82 = vector.load %arg6[%c0_34, %c0_35, %c0_36] : memref<2x64x64xf32, #tpu.memory_space<vmem>>, vector<1x64x64xf32>
    %83 = vector.shape_cast %82 : vector<1x64x64xf32> to vector<64x64xf32>
    %cst_37 = arith.constant dense<0.000000e+00> : vector<16x64xf32>
    %84 = tpu.matmul %81, %83, %cst_37 {dimension_numbers = #tpu.dot_dimension_numbers<[1], [0], [0], [1], [0, 0, 1, 1], [], []>} : vector<16x64xf32>, vector<64x64xf32>, vector<16x64xf32> -> vector<16x64xf32>
    %c0_38 = arith.constant 0 : index
    %c0_39 = arith.constant 0 : index
    %c0_40 = arith.constant 0 : index
    %85 = vector.load %arg7[%c0_38, %c0_39, %c0_40] : memref<2x1x64xf32, #tpu.memory_space<vmem>>, vector<1x1x64xf32>
    %86 = vector.shape_cast %85 : vector<1x1x64xf32> to vector<1x64xf32>
    %87 = vector.broadcast %86 : vector<1x64xf32> to vector<16x64xf32>
    %88 = arith.addf %84, %87 : vector<16x64xf32>
    %89 = arith.addf %88, %24 : vector<16x64xf32>
    %c0_41 = arith.constant 0 : index
    %c0_42 = arith.constant 0 : index
    %c0_43 = arith.constant 0 : index
    %90 = vector.load %arg8[%c0_41, %c0_42, %c0_43] : memref<2x1x64xf32, #tpu.memory_space<vmem>>, vector<1x1x64xf32>
    %91 = vector.shape_cast %90 : vector<1x1x64xf32> to vector<1x64xf32>
    %c0_44 = arith.constant 0 : index
    %c0_45 = arith.constant 0 : index
    %c0_46 = arith.constant 0 : index
    %92 = vector.load %arg9[%c0_44, %c0_45, %c0_46] : memref<2x1x64xf32, #tpu.memory_space<vmem>>, vector<1x1x64xf32>
    %93 = vector.shape_cast %92 : vector<1x1x64xf32> to vector<1x64xf32>
    %cst_47 = arith.constant dense<0.000000e+00> : vector<16xf32>
    %94 = vector.multi_reduction <add>, %89, %cst_47 [1] : vector<16x64xf32> to vector<16xf32>
    %95 = vector.shape_cast %94 : vector<16xf32> to vector<16x1xf32>
    %cst_48 = arith.constant 6.400000e+01 : f32
    %96 = vector.broadcast %cst_48 : f32 to vector<16x1xf32>
    %97 = arith.divf %95, %96 : vector<16x1xf32>
    %98 = vector.broadcast %97 : vector<16x1xf32> to vector<16x64xf32>
    %99 = arith.subf %89, %98 : vector<16x64xf32>
    %100 = arith.mulf %99, %99 : vector<16x64xf32>
    %cst_49 = arith.constant dense<0.000000e+00> : vector<16xf32>
    %101 = vector.multi_reduction <add>, %100, %cst_49 [1] : vector<16x64xf32> to vector<16xf32>
    %102 = vector.shape_cast %101 : vector<16xf32> to vector<16x1xf32>
    %cst_50 = arith.constant 6.400000e+01 : f32
    %103 = vector.broadcast %cst_50 : f32 to vector<16x1xf32>
    %104 = arith.divf %102, %103 : vector<16x1xf32>
    %105 = vector.broadcast %97 : vector<16x1xf32> to vector<16x64xf32>
    %106 = arith.subf %89, %105 : vector<16x64xf32>
    %cst_51 = arith.constant 9.99999996E-13 : f32
    %107 = vector.broadcast %cst_51 : f32 to vector<16x1xf32>
    %108 = arith.addf %104, %107 : vector<16x1xf32>
    %109 = math.rsqrt %108 : vector<16x1xf32>
    %110 = vector.broadcast %109 : vector<16x1xf32> to vector<16x64xf32>
    %111 = arith.mulf %106, %110 : vector<16x64xf32>
    %112 = vector.broadcast %91 : vector<1x64xf32> to vector<16x64xf32>
    %113 = arith.mulf %111, %112 : vector<16x64xf32>
    %114 = vector.broadcast %93 : vector<1x64xf32> to vector<16x64xf32>
    %115 = arith.addf %113, %114 : vector<16x64xf32>
    %c0_52 = arith.constant 0 : index
    %c0_53 = arith.constant 0 : index
    %c0_54 = arith.constant 0 : index
    %116 = vector.load %arg10[%c0_52, %c0_53, %c0_54] : memref<2x64x128xf32, #tpu.memory_space<vmem>>, vector<1x64x128xf32>
    %117 = vector.shape_cast %116 : vector<1x64x128xf32> to vector<64x128xf32>
    %cst_55 = arith.constant dense<0.000000e+00> : vector<16x128xf32>
    %118 = tpu.matmul %115, %117, %cst_55 {dimension_numbers = #tpu.dot_dimension_numbers<[1], [0], [0], [1], [0, 0, 1, 1], [], []>} : vector<16x64xf32>, vector<64x128xf32>, vector<16x128xf32> -> vector<16x128xf32>
    %c0_56 = arith.constant 0 : index
    %c0_57 = arith.constant 0 : index
    %c0_58 = arith.constant 0 : index
    %119 = vector.load %arg11[%c0_56, %c0_57, %c0_58] : memref<2x1x128xf32, #tpu.memory_space<vmem>>, vector<1x1x128xf32>
    %120 = vector.shape_cast %119 : vector<1x1x128xf32> to vector<1x128xf32>
    %121 = vector.broadcast %120 : vector<1x128xf32> to vector<16x128xf32>
    %122 = arith.addf %118, %121 : vector<16x128xf32>
    %123 = arith.mulf %122, %122 : vector<16x128xf32>
    %124 = arith.mulf %122, %123 : vector<16x128xf32>
    %cst_59 = arith.constant 4.471500e-02 : f32
    %125 = vector.broadcast %cst_59 : f32 to vector<16x128xf32>
    %126 = arith.mulf %125, %124 : vector<16x128xf32>
    %127 = arith.addf %122, %126 : vector<16x128xf32>
    %cst_60 = arith.constant 0.797884583 : f32
    %128 = vector.broadcast %cst_60 : f32 to vector<16x128xf32>
    %129 = arith.mulf %128, %127 : vector<16x128xf32>
    %130 = math.tanh %129 : vector<16x128xf32>
    %cst_61 = arith.constant 1.000000e+00 : f32
    %131 = vector.broadcast %cst_61 : f32 to vector<16x128xf32>
    %132 = arith.addf %131, %130 : vector<16x128xf32>
    %cst_62 = arith.constant 5.000000e-01 : f32
    %133 = vector.broadcast %cst_62 : f32 to vector<16x128xf32>
    %134 = arith.mulf %133, %132 : vector<16x128xf32>
    %135 = arith.mulf %122, %134 : vector<16x128xf32>
    %c0_63 = arith.constant 0 : index
    %c0_64 = arith.constant 0 : index
    %c0_65 = arith.constant 0 : index
    %136 = vector.load %arg12[%c0_63, %c0_64, %c0_65] : memref<2x128x64xf32, #tpu.memory_space<vmem>>, vector<1x128x64xf32>
    %137 = vector.shape_cast %136 : vector<1x128x64xf32> to vector<128x64xf32>
    %cst_66 = arith.constant dense<0.000000e+00> : vector<16x64xf32>
    %138 = tpu.matmul %135, %137, %cst_66 {dimension_numbers = #tpu.dot_dimension_numbers<[1], [0], [0], [1], [0, 0, 1, 1], [], []>} : vector<16x128xf32>, vector<128x64xf32>, vector<16x64xf32> -> vector<16x64xf32>
    %c0_67 = arith.constant 0 : index
    %c0_68 = arith.constant 0 : index
    %c0_69 = arith.constant 0 : index
    %139 = vector.load %arg13[%c0_67, %c0_68, %c0_69] : memref<2x1x64xf32, #tpu.memory_space<vmem>>, vector<1x1x64xf32>
    %140 = vector.shape_cast %139 : vector<1x1x64xf32> to vector<1x64xf32>
    %141 = vector.broadcast %140 : vector<1x64xf32> to vector<16x64xf32>
    %142 = arith.addf %138, %141 : vector<16x64xf32>
    %143 = arith.addf %142, %115 : vector<16x64xf32>
    %c0_70 = arith.constant 0 : index
    %c0_71 = arith.constant 0 : index
    %c0_72 = arith.constant 0 : index
    %144 = vector.load %arg14[%c0_70, %c0_71, %c0_72] : memref<2x1x64xf32, #tpu.memory_space<vmem>>, vector<1x1x64xf32>
    %145 = vector.shape_cast %144 : vector<1x1x64xf32> to vector<1x64xf32>
    %c0_73 = arith.constant 0 : index
    %c0_74 = arith.constant 0 : index
    %c0_75 = arith.constant 0 : index
    %146 = vector.load %arg15[%c0_73, %c0_74, %c0_75] : memref<2x1x64xf32, #tpu.memory_space<vmem>>, vector<1x1x64xf32>
    %147 = vector.shape_cast %146 : vector<1x1x64xf32> to vector<1x64xf32>
    %cst_76 = arith.constant dense<0.000000e+00> : vector<16xf32>
    %148 = vector.multi_reduction <add>, %143, %cst_76 [1] : vector<16x64xf32> to vector<16xf32>
    %149 = vector.shape_cast %148 : vector<16xf32> to vector<16x1xf32>
    %cst_77 = arith.constant 6.400000e+01 : f32
    %150 = vector.broadcast %cst_77 : f32 to vector<16x1xf32>
    %151 = arith.divf %149, %150 : vector<16x1xf32>
    %152 = vector.broadcast %151 : vector<16x1xf32> to vector<16x64xf32>
    %153 = arith.subf %143, %152 : vector<16x64xf32>
    %154 = arith.mulf %153, %153 : vector<16x64xf32>
    %cst_78 = arith.constant dense<0.000000e+00> : vector<16xf32>
    %155 = vector.multi_reduction <add>, %154, %cst_78 [1] : vector<16x64xf32> to vector<16xf32>
    %156 = vector.shape_cast %155 : vector<16xf32> to vector<16x1xf32>
    %cst_79 = arith.constant 6.400000e+01 : f32
    %157 = vector.broadcast %cst_79 : f32 to vector<16x1xf32>
    %158 = arith.divf %156, %157 : vector<16x1xf32>
    %159 = vector.broadcast %151 : vector<16x1xf32> to vector<16x64xf32>
    %160 = arith.subf %143, %159 : vector<16x64xf32>
    %cst_80 = arith.constant 9.99999996E-13 : f32
    %161 = vector.broadcast %cst_80 : f32 to vector<16x1xf32>
    %162 = arith.addf %158, %161 : vector<16x1xf32>
    %163 = math.rsqrt %162 : vector<16x1xf32>
    %164 = vector.broadcast %163 : vector<16x1xf32> to vector<16x64xf32>
    %165 = arith.mulf %160, %164 : vector<16x64xf32>
    %166 = vector.broadcast %145 : vector<1x64xf32> to vector<16x64xf32>
    %167 = arith.mulf %165, %166 : vector<16x64xf32>
    %168 = vector.broadcast %147 : vector<1x64xf32> to vector<16x64xf32>
    %169 = arith.addf %167, %168 : vector<16x64xf32>
    %c1 = arith.constant 1 : index
    %c0_81 = arith.constant 0 : index
    %c0_82 = arith.constant 0 : index
    %170 = vector.load %arg4[%c1, %c0_81, %c0_82] : memref<2x64x192xf32, #tpu.memory_space<vmem>>, vector<1x64x192xf32>
    %171 = vector.shape_cast %170 : vector<1x64x192xf32> to vector<64x192xf32>
    %cst_83 = arith.constant dense<0.000000e+00> : vector<16x192xf32>
    %172 = tpu.matmul %169, %171, %cst_83 {dimension_numbers = #tpu.dot_dimension_numbers<[1], [0], [0], [1], [0, 0, 1, 1], [], []>} : vector<16x64xf32>, vector<64x192xf32>, vector<16x192xf32> -> vector<16x192xf32>
    %c1_84 = arith.constant 1 : index
    %c0_85 = arith.constant 0 : index
    %c0_86 = arith.constant 0 : index
    %173 = vector.load %arg5[%c1_84, %c0_85, %c0_86] : memref<2x1x192xf32, #tpu.memory_space<vmem>>, vector<1x1x192xf32>
    %174 = vector.shape_cast %173 : vector<1x1x192xf32> to vector<1x192xf32>
    %175 = vector.broadcast %174 : vector<1x192xf32> to vector<16x192xf32>
    %176 = arith.addf %172, %175 : vector<16x192xf32>
    %177 = vector.extract_strided_slice %176 {offsets = [0, 0], sizes = [16, 64], strides = [1, 1]} : vector<16x192xf32> to vector<16x64xf32>
    %178 = vector.shape_cast %177 : vector<16x64xf32> to vector<2x8x64xf32>
    %179 = vector.extract_strided_slice %176 {offsets = [0, 64], sizes = [16, 64], strides = [1, 1]} : vector<16x192xf32> to vector<16x64xf32>
    %180 = vector.shape_cast %179 : vector<16x64xf32> to vector<2x8x64xf32>
    %181 = vector.extract_strided_slice %176 {offsets = [0, 128], sizes = [16, 64], strides = [1, 1]} : vector<16x192xf32> to vector<16x64xf32>
    %182 = vector.shape_cast %181 : vector<16x64xf32> to vector<2x8x64xf32>
    %183 = vector.extract_strided_slice %178 {offsets = [0, 0, 0], sizes = [2, 8, 32], strides = [1, 1, 1]} : vector<2x8x64xf32> to vector<2x8x32xf32>
    %184 = vector.extract_strided_slice %180 {offsets = [0, 0, 0], sizes = [2, 8, 32], strides = [1, 1, 1]} : vector<2x8x64xf32> to vector<2x8x32xf32>
    %185 = vector.extract_strided_slice %182 {offsets = [0, 0, 0], sizes = [2, 8, 32], strides = [1, 1, 1]} : vector<2x8x64xf32> to vector<2x8x32xf32>
    "tpu.trace_start"() <{level = 10 : i32, message = "bqd,bkd->bqk"}> : () -> ()
    %cst_87 = arith.constant dense<0.000000e+00> : vector<2x8x8xf32>
    %186 = tpu.matmul %183, %184, %cst_87 {dimension_numbers = #tpu.dot_dimension_numbers<[2], [2], [1], [1], [0, 0, 0, 1, 1, 1], [0], [0]>} : vector<2x8x32xf32>, vector<2x8x32xf32>, vector<2x8x8xf32> -> vector<2x8x8xf32>
    "tpu.trace_stop"() : () -> ()
    %cst_88 = arith.constant 0.176776692 : f32
    %187 = vector.broadcast %cst_88 : f32 to vector<2x8x8xf32>
    %188 = arith.mulf %186, %187 : vector<2x8x8xf32>
    %189 = vector.broadcast %25 : vector<2x1x8xf32> to vector<2x8x8xf32>
    %190 = arith.addf %188, %189 : vector<2x8x8xf32>
    %cst_89 = arith.constant dense<0xFF800000> : vector<2x8xf32>
    %191 = vector.multi_reduction <maximumf>, %190, %cst_89 [2] : vector<2x8x8xf32> to vector<2x8xf32>
    %192 = vector.shape_cast %191 : vector<2x8xf32> to vector<2x8x1xf32>
    %193 = vector.broadcast %192 : vector<2x8x1xf32> to vector<2x8x8xf32>
    %194 = arith.subf %190, %193 : vector<2x8x8xf32>
    %195 = math.exp %194 : vector<2x8x8xf32>
    %cst_90 = arith.constant dense<0.000000e+00> : vector<2x8xf32>
    %196 = vector.multi_reduction <add>, %195, %cst_90 [2] : vector<2x8x8xf32> to vector<2x8xf32>
    %197 = vector.shape_cast %196 : vector<2x8xf32> to vector<2x8x1xf32>
    %198 = tpu.reciprocal %197 {approx = true} : vector<2x8x1xf32> -> vector<2x8x1xf32>
    %199 = vector.broadcast %198 : vector<2x8x1xf32> to vector<2x8x8xf32>
    %200 = arith.mulf %195, %199 : vector<2x8x8xf32>
    "tpu.trace_start"() <{level = 10 : i32, message = "bqk,bkd->bqd"}> : () -> ()
    %cst_91 = arith.constant dense<0.000000e+00> : vector<2x8x32xf32>
    %201 = tpu.matmul %200, %185, %cst_91 {dimension_numbers = #tpu.dot_dimension_numbers<[2], [1], [1], [2], [0, 0, 0, 1, 1, 2], [0], [0]>} : vector<2x8x8xf32>, vector<2x8x32xf32>, vector<2x8x32xf32> -> vector<2x8x32xf32>
    "tpu.trace_stop"() : () -> ()
    %202 = vector.shape_cast %201 : vector<2x8x32xf32> to vector<16x32xf32>
    %c0_92 = arith.constant 0 : index
    %c0_93 = arith.constant 0 : index
    %203 = vector.load %arg21[%c0_92, %c0_93] : memref<16x64xf32, #tpu.memory_space<vmem>>, vector<16x32xf32>
    tpu.vector_store %arg21[%c0_92, %c0_93], %202 {strides = array<i32>} : memref<16x64xf32, #tpu.memory_space<vmem>>, vector<16x32xf32>,
    %204 = vector.extract_strided_slice %178 {offsets = [0, 0, 32], sizes = [2, 8, 32], strides = [1, 1, 1]} : vector<2x8x64xf32> to vector<2x8x32xf32>
    %205 = vector.extract_strided_slice %180 {offsets = [0, 0, 32], sizes = [2, 8, 32], strides = [1, 1, 1]} : vector<2x8x64xf32> to vector<2x8x32xf32>
    %206 = vector.extract_strided_slice %182 {offsets = [0, 0, 32], sizes = [2, 8, 32], strides = [1, 1, 1]} : vector<2x8x64xf32> to vector<2x8x32xf32>
    "tpu.trace_start"() <{level = 10 : i32, message = "bqd,bkd->bqk"}> : () -> ()
    %cst_94 = arith.constant dense<0.000000e+00> : vector<2x8x8xf32>
    %207 = tpu.matmul %204, %205, %cst_94 {dimension_numbers = #tpu.dot_dimension_numbers<[2], [2], [1], [1], [0, 0, 0, 1, 1, 1], [0], [0]>} : vector<2x8x32xf32>, vector<2x8x32xf32>, vector<2x8x8xf32> -> vector<2x8x8xf32>
    "tpu.trace_stop"() : () -> ()
    %cst_95 = arith.constant 0.176776692 : f32
    %208 = vector.broadcast %cst_95 : f32 to vector<2x8x8xf32>
    %209 = arith.mulf %207, %208 : vector<2x8x8xf32>
    %210 = vector.broadcast %25 : vector<2x1x8xf32> to vector<2x8x8xf32>
    %211 = arith.addf %209, %210 : vector<2x8x8xf32>
    %cst_96 = arith.constant dense<0xFF800000> : vector<2x8xf32>
    %212 = vector.multi_reduction <maximumf>, %211, %cst_96 [2] : vector<2x8x8xf32> to vector<2x8xf32>
    %213 = vector.shape_cast %212 : vector<2x8xf32> to vector<2x8x1xf32>
    %214 = vector.broadcast %213 : vector<2x8x1xf32> to vector<2x8x8xf32>
    %215 = arith.subf %211, %214 : vector<2x8x8xf32>
    %216 = math.exp %215 : vector<2x8x8xf32>
    %cst_97 = arith.constant dense<0.000000e+00> : vector<2x8xf32>
    %217 = vector.multi_reduction <add>, %216, %cst_97 [2] : vector<2x8x8xf32> to vector<2x8xf32>
    %218 = vector.shape_cast %217 : vector<2x8xf32> to vector<2x8x1xf32>
    %219 = tpu.reciprocal %218 {approx = true} : vector<2x8x1xf32> -> vector<2x8x1xf32>
    %220 = vector.broadcast %219 : vector<2x8x1xf32> to vector<2x8x8xf32>
    %221 = arith.mulf %216, %220 : vector<2x8x8xf32>
    "tpu.trace_start"() <{level = 10 : i32, message = "bqk,bkd->bqd"}> : () -> ()
    %cst_98 = arith.constant dense<0.000000e+00> : vector<2x8x32xf32>
    %222 = tpu.matmul %221, %206, %cst_98 {dimension_numbers = #tpu.dot_dimension_numbers<[2], [1], [1], [2], [0, 0, 0, 1, 1, 2], [0], [0]>} : vector<2x8x8xf32>, vector<2x8x32xf32>, vector<2x8x32xf32> -> vector<2x8x32xf32>
    "tpu.trace_stop"() : () -> ()
    %223 = vector.shape_cast %222 : vector<2x8x32xf32> to vector<16x32xf32>
    %c0_99 = arith.constant 0 : index
    %c32_100 = arith.constant 32 : index
    %224 = vector.load %arg21[%c0_99, %c32_100] : memref<16x64xf32, #tpu.memory_space<vmem>>, vector<16x32xf32>
    tpu.vector_store %arg21[%c0_99, %c32_100], %223 {strides = array<i32>} : memref<16x64xf32, #tpu.memory_space<vmem>>, vector<16x32xf32>,
    %c0_101 = arith.constant 0 : index
    %c0_102 = arith.constant 0 : index
    %225 = vector.load %arg21[%c0_101, %c0_102] : memref<16x64xf32, #tpu.memory_space<vmem>>, vector<16x64xf32>
    %c1_103 = arith.constant 1 : index
    %c0_104 = arith.constant 0 : index
    %c0_105 = arith.constant 0 : index
    %226 = vector.load %arg6[%c1_103, %c0_104, %c0_105] : memref<2x64x64xf32, #tpu.memory_space<vmem>>, vector<1x64x64xf32>
    %227 = vector.shape_cast %226 : vector<1x64x64xf32> to vector<64x64xf32>
    %cst_106 = arith.constant dense<0.000000e+00> : vector<16x64xf32>
    %228 = tpu.matmul %225, %227, %cst_106 {dimension_numbers = #tpu.dot_dimension_numbers<[1], [0], [0], [1], [0, 0, 1, 1], [], []>} : vector<16x64xf32>, vector<64x64xf32>, vector<16x64xf32> -> vector<16x64xf32>
    %c1_107 = arith.constant 1 : index
    %c0_108 = arith.constant 0 : index
    %c0_109 = arith.constant 0 : index
    %229 = vector.load %arg7[%c1_107, %c0_108, %c0_109] : memref<2x1x64xf32, #tpu.memory_space<vmem>>, vector<1x1x64xf32>
    %230 = vector.shape_cast %229 : vector<1x1x64xf32> to vector<1x64xf32>
    %231 = vector.broadcast %230 : vector<1x64xf32> to vector<16x64xf32>
    %232 = arith.addf %228, %231 : vector<16x64xf32>
    %233 = arith.addf %232, %169 : vector<16x64xf32>
    %c1_110 = arith.constant 1 : index
    %c0_111 = arith.constant 0 : index
    %c0_112 = arith.constant 0 : index
    %234 = vector.load %arg8[%c1_110, %c0_111, %c0_112] : memref<2x1x64xf32, #tpu.memory_space<vmem>>, vector<1x1x64xf32>
    %235 = vector.shape_cast %234 : vector<1x1x64xf32> to vector<1x64xf32>
    %c1_113 = arith.constant 1 : index
    %c0_114 = arith.constant 0 : index
    %c0_115 = arith.constant 0 : index
    %236 = vector.load %arg9[%c1_113, %c0_114, %c0_115] : memref<2x1x64xf32, #tpu.memory_space<vmem>>, vector<1x1x64xf32>
    %237 = vector.shape_cast %236 : vector<1x1x64xf32> to vector<1x64xf32>
    %cst_116 = arith.constant dense<0.000000e+00> : vector<16xf32>
    %238 = vector.multi_reduction <add>, %233, %cst_116 [1] : vector<16x64xf32> to vector<16xf32>
    %239 = vector.shape_cast %238 : vector<16xf32> to vector<16x1xf32>
    %cst_117 = arith.constant 6.400000e+01 : f32
    %240 = vector.broadcast %cst_117 : f32 to vector<16x1xf32>
    %241 = arith.divf %239, %240 : vector<16x1xf32>
    %242 = vector.broadcast %241 : vector<16x1xf32> to vector<16x64xf32>
    %243 = arith.subf %233, %242 : vector<16x64xf32>
    %244 = arith.mulf %243, %243 : vector<16x64xf32>
    %cst_118 = arith.constant dense<0.000000e+00> : vector<16xf32>
    %245 = vector.multi_reduction <add>, %244, %cst_118 [1] : vector<16x64xf32> to vector<16xf32>
    %246 = vector.shape_cast %245 : vector<16xf32> to vector<16x1xf32>
    %cst_119 = arith.constant 6.400000e+01 : f32
    %247 = vector.broadcast %cst_119 : f32 to vector<16x1xf32>
    %248 = arith.divf %246, %247 : vector<16x1xf32>
    %249 = vector.broadcast %241 : vector<16x1xf32> to vector<16x64xf32>
    %250 = arith.subf %233, %249 : vector<16x64xf32>
    %cst_120 = arith.constant 9.99999996E-13 : f32
    %251 = vector.broadcast %cst_120 : f32 to vector<16x1xf32>
    %252 = arith.addf %248, %251 : vector<16x1xf32>
    %253 = math.rsqrt %252 : vector<16x1xf32>
    %254 = vector.broadcast %253 : vector<16x1xf32> to vector<16x64xf32>
    %255 = arith.mulf %250, %254 : vector<16x64xf32>
    %256 = vector.broadcast %235 : vector<1x64xf32> to vector<16x64xf32>
    %257 = arith.mulf %255, %256 : vector<16x64xf32>
    %258 = vector.broadcast %237 : vector<1x64xf32> to vector<16x64xf32>
    %259 = arith.addf %257, %258 : vector<16x64xf32>
    %c1_121 = arith.constant 1 : index
    %c0_122 = arith.constant 0 : index
    %c0_123 = arith.constant 0 : index
    %260 = vector.load %arg10[%c1_121, %c0_122, %c0_123] : memref<2x64x128xf32, #tpu.memory_space<vmem>>, vector<1x64x128xf32>
    %261 = vector.shape_cast %260 : vector<1x64x128xf32> to vector<64x128xf32>
    %cst_124 = arith.constant dense<0.000000e+00> : vector<16x128xf32>
    %262 = tpu.matmul %259, %261, %cst_124 {dimension_numbers = #tpu.dot_dimension_numbers<[1], [0], [0], [1], [0, 0, 1, 1], [], []>} : vector<16x64xf32>, vector<64x128xf32>, vector<16x128xf32> -> vector<16x128xf32>
    %c1_125 = arith.constant 1 : index
    %c0_126 = arith.constant 0 : index
    %c0_127 = arith.constant 0 : index
    %263 = vector.load %arg11[%c1_125, %c0_126, %c0_127] : memref<2x1x128xf32, #tpu.memory_space<vmem>>, vector<1x1x128xf32>
    %264 = vector.shape_cast %263 : vector<1x1x128xf32> to vector<1x128xf32>
    %265 = vector.broadcast %264 : vector<1x128xf32> to vector<16x128xf32>
    %266 = arith.addf %262, %265 : vector<16x128xf32>
    %267 = arith.mulf %266, %266 : vector<16x128xf32>
    %268 = arith.mulf %266, %267 : vector<16x128xf32>
    %cst_128 = arith.constant 4.471500e-02 : f32
    %269 = vector.broadcast %cst_128 : f32 to vector<16x128xf32>
    %270 = arith.mulf %269, %268 : vector<16x128xf32>
    %271 = arith.addf %266, %270 : vector<16x128xf32>
    %cst_129 = arith.constant 0.797884583 : f32
    %272 = vector.broadcast %cst_129 : f32 to vector<16x128xf32>
    %273 = arith.mulf %272, %271 : vector<16x128xf32>
    %274 = math.tanh %273 : vector<16x128xf32>
    %cst_130 = arith.constant 1.000000e+00 : f32
    %275 = vector.broadcast %cst_130 : f32 to vector<16x128xf32>
    %276 = arith.addf %275, %274 : vector<16x128xf32>
    %cst_131 = arith.constant 5.000000e-01 : f32
    %277 = vector.broadcast %cst_131 : f32 to vector<16x128xf32>
    %278 = arith.mulf %277, %276 : vector<16x128xf32>
    %279 = arith.mulf %266, %278 : vector<16x128xf32>
    %c1_132 = arith.constant 1 : index
    %c0_133 = arith.constant 0 : index
    %c0_134 = arith.constant 0 : index
    %280 = vector.load %arg12[%c1_132, %c0_133, %c0_134] : memref<2x128x64xf32, #tpu.memory_space<vmem>>, vector<1x128x64xf32>
    %281 = vector.shape_cast %280 : vector<1x128x64xf32> to vector<128x64xf32>
    %cst_135 = arith.constant dense<0.000000e+00> : vector<16x64xf32>
    %282 = tpu.matmul %279, %281, %cst_135 {dimension_numbers = #tpu.dot_dimension_numbers<[1], [0], [0], [1], [0, 0, 1, 1], [], []>} : vector<16x128xf32>, vector<128x64xf32>, vector<16x64xf32> -> vector<16x64xf32>
    %c1_136 = arith.constant 1 : index
    %c0_137 = arith.constant 0 : index
    %c0_138 = arith.constant 0 : index
    %283 = vector.load %arg13[%c1_136, %c0_137, %c0_138] : memref<2x1x64xf32, #tpu.memory_space<vmem>>, vector<1x1x64xf32>
    %284 = vector.shape_cast %283 : vector<1x1x64xf32> to vector<1x64xf32>
    %285 = vector.broadcast %284 : vector<1x64xf32> to vector<16x64xf32>
    %286 = arith.addf %282, %285 : vector<16x64xf32>
    %287 = arith.addf %286, %259 : vector<16x64xf32>
    %c1_139 = arith.constant 1 : index
    %c0_140 = arith.constant 0 : index
    %c0_141 = arith.constant 0 : index
    %288 = vector.load %arg14[%c1_139, %c0_140, %c0_141] : memref<2x1x64xf32, #tpu.memory_space<vmem>>, vector<1x1x64xf32>
    %289 = vector.shape_cast %288 : vector<1x1x64xf32> to vector<1x64xf32>
    %c1_142 = arith.constant 1 : index
    %c0_143 = arith.constant 0 : index
    %c0_144 = arith.constant 0 : index
    %290 = vector.load %arg15[%c1_142, %c0_143, %c0_144] : memref<2x1x64xf32, #tpu.memory_space<vmem>>, vector<1x1x64xf32>
    %291 = vector.shape_cast %290 : vector<1x1x64xf32> to vector<1x64xf32>
    %cst_145 = arith.constant dense<0.000000e+00> : vector<16xf32>
    %292 = vector.multi_reduction <add>, %287, %cst_145 [1] : vector<16x64xf32> to vector<16xf32>
    %293 = vector.shape_cast %292 : vector<16xf32> to vector<16x1xf32>
    %cst_146 = arith.constant 6.400000e+01 : f32
    %294 = vector.broadcast %cst_146 : f32 to vector<16x1xf32>
    %295 = arith.divf %293, %294 : vector<16x1xf32>
    %296 = vector.broadcast %295 : vector<16x1xf32> to vector<16x64xf32>
    %297 = arith.subf %287, %296 : vector<16x64xf32>
    %298 = arith.mulf %297, %297 : vector<16x64xf32>
    %cst_147 = arith.constant dense<0.000000e+00> : vector<16xf32>
    %299 = vector.multi_reduction <add>, %298, %cst_147 [1] : vector<16x64xf32> to vector<16xf32>
    %300 = vector.shape_cast %299 : vector<16xf32> to vector<16x1xf32>
    %cst_148 = arith.constant 6.400000e+01 : f32
    %301 = vector.broadcast %cst_148 : f32 to vector<16x1xf32>
    %302 = arith.divf %300, %301 : vector<16x1xf32>
    %303 = vector.broadcast %295 : vector<16x1xf32> to vector<16x64xf32>
    %304 = arith.subf %287, %303 : vector<16x64xf32>
    %cst_149 = arith.constant 9.99999996E-13 : f32
    %305 = vector.broadcast %cst_149 : f32 to vector<16x1xf32>
    %306 = arith.addf %302, %305 : vector<16x1xf32>
    %307 = math.rsqrt %306 : vector<16x1xf32>
    %308 = vector.broadcast %307 : vector<16x1xf32> to vector<16x64xf32>
    %309 = arith.mulf %304, %308 : vector<16x64xf32>
    %310 = vector.broadcast %289 : vector<1x64xf32> to vector<16x64xf32>
    %311 = arith.mulf %309, %310 : vector<16x64xf32>
    %312 = vector.broadcast %291 : vector<1x64xf32> to vector<16x64xf32>
    %313 = arith.addf %311, %312 : vector<16x64xf32>
    %c0_150 = arith.constant 0 : index
    %c0_151 = arith.constant 0 : index
    %314 = vector.load %arg16[%c0_150, %c0_151] : memref<64x128xf32, #tpu.memory_space<vmem>>, vector<64x128xf32>
    %cst_152 = arith.constant dense<0.000000e+00> : vector<16x128xf32>
    %315 = tpu.matmul %313, %314, %cst_152 {dimension_numbers = #tpu.dot_dimension_numbers<[1], [0], [0], [1], [0, 0, 1, 1], [], []>} : vector<16x64xf32>, vector<64x128xf32>, vector<16x128xf32> -> vector<16x128xf32>
    %c0_153 = arith.constant 0 : index
    %c0_154 = arith.constant 0 : index
    %316 = vector.load %arg17[%c0_153, %c0_154] : memref<1x128xf32, #tpu.memory_space<vmem>>, vector<1x128xf32>
    %317 = vector.broadcast %316 : vector<1x128xf32> to vector<16x128xf32>
    %318 = arith.addf %315, %317 : vector<16x128xf32>
    %c0_155 = arith.constant 0 : index
    %c0_156 = arith.constant 0 : index
    %319 = vector.load %arg19[%c0_155, %c0_156] : memref<16x128xf32, #tpu.memory_space<vmem>>, vector<16x128xf32>
    tpu.vector_store %arg19[%c0_155, %c0_156], %318 {strides = array<i32>} : memref<16x128xf32, #tpu.memory_space<vmem>>, vector<16x128xf32>,
    %320 = tpu.iota {dimensions = array<i32: 1>} : vector<16x128xi32>
    %c0_157 = arith.constant 0 : index
    %c0_158 = arith.constant 0 : index
    %321 = vector.load %arg18[%c0_157, %c0_158] : memref<16x3xi32, #tpu.memory_space<vmem>>, vector<16x3xi32>
    %322 = vector.extract_strided_slice %321 {offsets = [0, 0], sizes = [16, 1], strides = [1, 1]} : vector<16x3xi32> to vector<16x1xi32>
    %c0_i32 = arith.constant 0 : i32
    %323 = vector.broadcast %c0_i32 : i32 to vector<16x128xi32>
    %324 = arith.cmpi sge, %320, %323 : vector<16x128xi32>
    %c5_i32 = arith.constant 5 : i32
    %325 = vector.broadcast %c5_i32 : i32 to vector<16x128xi32>
    %326 = arith.cmpi slt, %320, %325 : vector<16x128xi32>
    %327 = arith.andi %324, %326 : vector<16x128xi1>
    %cst_159 = arith.constant -1.000000e+30 : f32
    %328 = vector.broadcast %cst_159 : f32 to vector<16x128xf32>
    %329 = arith.select %327, %318, %328 : vector<16x128xi1>, vector<16x128xf32>
    %cst_160 = arith.constant dense<0xFF800000> : vector<16xf32>
    %330 = vector.multi_reduction <maximumf>, %329, %cst_160 [1] : vector<16x128xf32> to vector<16xf32>
    %331 = vector.shape_cast %330 : vector<16xf32> to vector<16x1xf32>
    %332 = vector.broadcast %331 : vector<16x1xf32> to vector<16x128xf32>
    %333 = arith.subf %329, %332 : vector<16x128xf32>
    %334 = math.exp %333 : vector<16x128xf32>
    %cst_161 = arith.constant 0.000000e+00 : f32
    %335 = vector.broadcast %cst_161 : f32 to vector<16x128xf32>
    %336 = arith.select %327, %334, %335 : vector<16x128xi1>, vector<16x128xf32>
    %cst_162 = arith.constant dense<0.000000e+00> : vector<16xf32>
    %337 = vector.multi_reduction <add>, %336, %cst_162 [1] : vector<16x128xf32> to vector<16xf32>
    %338 = vector.shape_cast %337 : vector<16xf32> to vector<16x1xf32>
    %339 = math.log %338 : vector<16x1xf32>
    %340 = arith.addf %331, %339 : vector<16x1xf32>
    %c0_i32_163 = arith.constant 0 : i32
    %341 = vector.broadcast %c0_i32_163 : i32 to vector<16x1xi32>
    %342 = arith.addi %322, %341 : vector<16x1xi32>
    %343 = vector.broadcast %342 : vector<16x1xi32> to vector<16x128xi32>
    %344 = arith.cmpi eq, %320, %343 : vector<16x128xi32>
    %cst_164 = arith.constant 0.000000e+00 : f32
    %345 = vector.broadcast %cst_164 : f32 to vector<16x128xf32>
    %346 = arith.select %344, %318, %345 : vector<16x128xi1>, vector<16x128xf32>
    %cst_165 = arith.constant dense<0.000000e+00> : vector<16xf32>
    %347 = vector.multi_reduction <add>, %346, %cst_165 [1] : vector<16x128xf32> to vector<16xf32>
    %348 = vector.shape_cast %347 : vector<16xf32> to vector<16x1xf32>
    %c-100_i32 = arith.constant -100 : i32
    %349 = vector.broadcast %c-100_i32 : i32 to vector<16x1xi32>
    %350 = arith.cmpi ne, %322, %349 : vector<16x1xi32>
    %351 = arith.extui %350 : vector<16x1xi1> to vector<16x1xi32>
    %352 = arith.sitofp %351 : vector<16x1xi32> to vector<16x1xf32>
    %353 = arith.subf %340, %348 : vector<16x1xf32>
    %354 = arith.mulf %353, %352 : vector<16x1xf32>
    %cst_166 = arith.constant dense<0.000000e+00> : vector<1xf32>
    %355 = vector.multi_reduction <add>, %354, %cst_166 [0] : vector<16x1xf32> to vector<1xf32>
    %356 = vector.shape_cast %355 : vector<1xf32> to vector<1x1xf32>
    %cst_167 = arith.constant dense<0.000000e+00> : vector<1xf32>
    %357 = vector.multi_reduction <add>, %352, %cst_167 [0] : vector<16x1xf32> to vector<1xf32>
    %358 = vector.shape_cast %357 : vector<1xf32> to vector<1x1xf32>
    %cst_168 = arith.constant 1.000000e+00 : f32
    %359 = vector.broadcast %cst_168 : f32 to vector<1x1xf32>
    %360 = arith.maximumf %358, %359 : vector<1x1xf32>
    %361 = arith.divf %356, %360 : vector<1x1xf32>
    %362 = vector.extract_strided_slice %321 {offsets = [0, 1], sizes = [16, 1], strides = [1, 1]} : vector<16x3xi32> to vector<16x1xi32>
    %c5_i32_169 = arith.constant 5 : i32
    %363 = vector.broadcast %c5_i32_169 : i32 to vector<16x128xi32>
    %364 = arith.cmpi sge, %320, %363 : vector<16x128xi32>
    %c10_i32 = arith.constant 10 : i32
    %365 = vector.broadcast %c10_i32 : i32 to vector<16x128xi32>
    %366 = arith.cmpi slt, %320, %365 : vector<16x128xi32>
    %367 = arith.andi %364, %366 : vector<16x128xi1>
    %cst_170 = arith.constant -1.000000e+30 : f32
    %368 = vector.broadcast %cst_170 : f32 to vector<16x128xf32>
    %369 = arith.select %367, %318, %368 : vector<16x128xi1>, vector<16x128xf32>
    %cst_171 = arith.constant dense<0xFF800000> : vector<16xf32>
    %370 = vector.multi_reduction <maximumf>, %369, %cst_171 [1] : vector<16x128xf32> to vector<16xf32>
    %371 = vector.shape_cast %370 : vector<16xf32> to vector<16x1xf32>
    %372 = vector.broadcast %371 : vector<16x1xf32> to vector<16x128xf32>
    %373 = arith.subf %369, %372 : vector<16x128xf32>
    %374 = math.exp %373 : vector<16x128xf32>
    %cst_172 = arith.constant 0.000000e+00 : f32
    %375 = vector.broadcast %cst_172 : f32 to vector<16x128xf32>
    %376 = arith.select %367, %374, %375 : vector<16x128xi1>, vector<16x128xf32>
    %cst_173 = arith.constant dense<0.000000e+00> : vector<16xf32>
    %377 = vector.multi_reduction <add>, %376, %cst_173 [1] : vector<16x128xf32> to vector<16xf32>
    %378 = vector.shape_cast %377 : vector<16xf32> to vector<16x1xf32>
    %379 = math.log %378 : vector<16x1xf32>
    %380 = arith.addf %371, %379 : vector<16x1xf32>
    %c5_i32_174 = arith.constant 5 : i32
    %381 = vector.broadcast %c5_i32_174 : i32 to vector<16x1xi32>
    %382 = arith.addi %362, %381 : vector<16x1xi32>
    %383 = vector.broadcast %382 : vector<16x1xi32> to vector<16x128xi32>
    %384 = arith.cmpi eq, %320, %383 : vector<16x128xi32>
    %cst_175 = arith.constant 0.000000e+00 : f32
    %385 = vector.broadcast %cst_175 : f32 to vector<16x128xf32>
    %386 = arith.select %384, %318, %385 : vector<16x128xi1>, vector<16x128xf32>
    %cst_176 = arith.constant dense<0.000000e+00> : vector<16xf32>
    %387 = vector.multi_reduction <add>, %386, %cst_176 [1] : vector<16x128xf32> to vector<16xf32>
    %388 = vector.shape_cast %387 : vector<16xf32> to vector<16x1xf32>
    %c-100_i32_177 = arith.constant -100 : i32
    %389 = vector.broadcast %c-100_i32_177 : i32 to vector<16x1xi32>
    %390 = arith.cmpi ne, %362, %389 : vector<16x1xi32>
    %391 = arith.extui %390 : vector<16x1xi1> to vector<16x1xi32>
    %392 = arith.sitofp %391 : vector<16x1xi32> to vector<16x1xf32>
    %393 = arith.subf %380, %388 : vector<16x1xf32>
    %394 = arith.mulf %393, %392 : vector<16x1xf32>
    %cst_178 = arith.constant dense<0.000000e+00> : vector<1xf32>
    %395 = vector.multi_reduction <add>, %394, %cst_178 [0] : vector<16x1xf32> to vector<1xf32>
    %396 = vector.shape_cast %395 : vector<1xf32> to vector<1x1xf32>
    %cst_179 = arith.constant dense<0.000000e+00> : vector<1xf32>
    %397 = vector.multi_reduction <add>, %392, %cst_179 [0] : vector<16x1xf32> to vector<1xf32>
    %398 = vector.shape_cast %397 : vector<1xf32> to vector<1x1xf32>
    %cst_180 = arith.constant 1.000000e+00 : f32
    %399 = vector.broadcast %cst_180 : f32 to vector<1x1xf32>
    %400 = arith.maximumf %398, %399 : vector<1x1xf32>
    %401 = arith.divf %396, %400 : vector<1x1xf32>
    %402 = vector.extract_strided_slice %321 {offsets = [0, 2], sizes = [16, 1], strides = [1, 1]} : vector<16x3xi32> to vector<16x1xi32>
    %c10_i32_181 = arith.constant 10 : i32
    %403 = vector.broadcast %c10_i32_181 : i32 to vector<16x128xi32>
    %404 = arith.cmpi sge, %320, %403 : vector<16x128xi32>
    %c13_i32 = arith.constant 13 : i32
    %405 = vector.broadcast %c13_i32 : i32 to vector<16x128xi32>
    %406 = arith.cmpi slt, %320, %405 : vector<16x128xi32>
    %407 = arith.andi %404, %406 : vector<16x128xi1>
    %cst_182 = arith.constant -1.000000e+30 : f32
    %408 = vector.broadcast %cst_182 : f32 to vector<16x128xf32>
    %409 = arith.select %407, %318, %408 : vector<16x128xi1>, vector<16x128xf32>
    %cst_183 = arith.constant dense<0xFF800000> : vector<16xf32>
    %410 = vector.multi_reduction <maximumf>, %409, %cst_183 [1] : vector<16x128xf32> to vector<16xf32>
    %411 = vector.shape_cast %410 : vector<16xf32> to vector<16x1xf32>
    %412 = vector.broadcast %411 : vector<16x1xf32> to vector<16x128xf32>
    %413 = arith.subf %409, %412 : vector<16x128xf32>
    %414 = math.exp %413 : vector<16x128xf32>
    %cst_184 = arith.constant 0.000000e+00 : f32
    %415 = vector.broadcast %cst_184 : f32 to vector<16x128xf32>
    %416 = arith.select %407, %414, %415 : vector<16x128xi1>, vector<16x128xf32>
    %cst_185 = arith.constant dense<0.000000e+00> : vector<16xf32>
    %417 = vector.multi_reduction <add>, %416, %cst_185 [1] : vector<16x128xf32> to vector<16xf32>
    %418 = vector.shape_cast %417 : vector<16xf32> to vector<16x1xf32>
    %419 = math.log %418 : vector<16x1xf32>
    %420 = arith.addf %411, %419 : vector<16x1xf32>
    %c10_i32_186 = arith.constant 10 : i32
    %421 = vector.broadcast %c10_i32_186 : i32 to vector<16x1xi32>
    %422 = arith.addi %402, %421 : vector<16x1xi32>
    %423 = vector.broadcast %422 : vector<16x1xi32> to vector<16x128xi32>
    %424 = arith.cmpi eq, %320, %423 : vector<16x128xi32>
    %cst_187 = arith.constant 0.000000e+00 : f32
    %425 = vector.broadcast %cst_187 : f32 to vector<16x128xf32>
    %426 = arith.select %424, %318, %425 : vector<16x128xi1>, vector<16x128xf32>
    %cst_188 = arith.constant dense<0.000000e+00> : vector<16xf32>
    %427 = vector.multi_reduction <add>, %426, %cst_188 [1] : vector<16x128xf32> to vector<16xf32>
    %428 = vector.shape_cast %427 : vector<16xf32> to vector<16x1xf32>
    %c-100_i32_189 = arith.constant -100 : i32
    %429 = vector.broadcast %c-100_i32_189 : i32 to vector<16x1xi32>
    %430 = arith.cmpi ne, %402, %429 : vector<16x1xi32>
    %431 = arith.extui %430 : vector<16x1xi1> to vector<16x1xi32>
    %432 = arith.sitofp %431 : vector<16x1xi32> to vector<16x1xf32>
    %433 = arith.subf %420, %428 : vector<16x1xf32>
    %434 = arith.mulf %433, %432 : vector<16x1xf32>
    %cst_190 = arith.constant dense<0.000000e+00> : vector<1xf32>
    %435 = vector.multi_reduction <add>, %434, %cst_190 [0] : vector<16x1xf32> to vector<1xf32>
    %436 = vector.shape_cast %435 : vector<1xf32> to vector<1x1xf32>
    %cst_191 = arith.constant dense<0.000000e+00> : vector<1xf32>
    %437 = vector.multi_reduction <add>, %432, %cst_191 [0] : vector<16x1xf32> to vector<1xf32>
    %438 = vector.shape_cast %437 : vector<1xf32> to vector<1x1xf32>
    %cst_192 = arith.constant 1.000000e+00 : f32
    %439 = vector.broadcast %cst_192 : f32 to vector<1x1xf32>
    %440 = arith.maximumf %438, %439 : vector<1x1xf32>
    %441 = arith.divf %436, %440 : vector<1x1xf32>
    %cst_193 = arith.constant 0.699999988 : f32
    %442 = vector.broadcast %cst_193 : f32 to vector<1x1xf32>
    %443 = arith.mulf %442, %361 : vector<1x1xf32>
    %cst_194 = arith.constant 1.000000e-01 : f32
    %444 = vector.broadcast %cst_194 : f32 to vector<1x1xf32>
    %445 = arith.mulf %444, %401 : vector<1x1xf32>
    %446 = arith.addf %443, %445 : vector<1x1xf32>
    %cst_195 = arith.constant 2.000000e-01 : f32
    %447 = vector.broadcast %cst_195 : f32 to vector<1x1xf32>
    %448 = arith.mulf %447, %441 : vector<1x1xf32>
    %449 = arith.addf %446, %448 : vector<1x1xf32>
    %c0_196 = arith.constant 0 : index
    %c0_197 = arith.constant 0 : index
    %450 = vector.load %arg20[%c0_196, %c0_197] : memref<1x1xf32, #tpu.memory_space<vmem>>, vector<1x1xf32>
    tpu.vector_store %arg20[%c0_196, %c0_197], %449 {strides = array<i32>} : memref<1x1xf32, #tpu.memory_space<vmem>>, vector<1x1xf32>,
    return
  }
}

</mosaic_0001>

<bundles_post_ra>
// kernel: _forward_impl.1
= control target key start
LH: loop header
LB: loop body
LE: loop exit
PB: predicated region body
PF: predicated region fallthrough
CT: control target
= control target key end

     0   :  { %s4334_s0 = inlined_call_operand.vmem [shape: f32[16,64], index: 0, kind: input, shape index: {}]   ;;  %s4335_s1 = inlined_call_operand.vmem [shape: f32[2,1,8], index: 1, kind: input, shape index: {}]   ;;  %s4336_s2 = inlined_call_operand.vmem [shape: f32[1,64], index: 2, kind: input, shape index: {}]   ;;  %s4337_s3 = inlined_call_operand.vmem [shape: f32[1,64], index: 3, kind: input, shape index: {}]   ;;  %s4338_s4 = inlined_call_operand.vmem [shape: f32[2,64,192], index: 4, kind: input, shape index: {}]   ;;  %s4339_s5 = inlined_call_operand.vmem [shape: f32[2,1,192], index: 5, kind: input, shape index: {}]   ;;  %s4340_s6 = inlined_call_operand.vmem [shape: f32[2,64,64], index: 6, kind: input, shape index: {}]   ;;  %s4341_s7 = inlined_call_operand.vmem [shape: f32[2,1,64], index: 7, kind: input, shape index: {}]   ;;  %s4342_s8 = inlined_call_operand.vmem [shape: f32[2,1,64], index: 8, kind: input, shape index: {}]   ;;  %s4343_s9 = inlined_call_operand.vmem [shape: f32[2,1,64], index: 9, kind: input, shape index: {}]   ;;  %s4344_s10 = inlined_call_operand.vmem [shape: f32[2,64,128], index: 10, kind: input, shape index: {}]   ;;  %s4345_s11 = inlined_call_operand.vmem [shape: f32[2,1,128], index: 11, kind: input, shape index: {}]   ;;  %s4346_s12 = inlined_call_operand.vmem [shape: f32[2,128,64], index: 12, kind: input, shape index: {}]   ;;  %s4347_s13 = inlined_call_operand.vmem [shape: f32[2,1,64], index: 13, kind: input, shape index: {}]   ;;  %s4348_s14 = inlined_call_operand.vmem [shape: f32[2,1,64], index: 14, kind: input, shape index: {}]   ;;  %s4349_s15 = inlined_call_operand.vmem [shape: f32[2,1,64], index: 15, kind: input, shape index: {}]   ;;  %s4350_s16 = inlined_call_operand.vmem [shape: f32[64,128], index: 16, kind: input, shape index: {}]   ;;  %s4351_s17 = inlined_call_operand.vmem [shape: f32[1,128], index: 17, kind: input, shape index: {}]   ;;  %s4352_s18 = inlined_call_operand.vmem [shape: s32[16,3], index: 18, kind: input, shape index: {}]   ;;  %s4353_s19 = inlined_call_operand.vmem [shape: f32[16,128], index: 19, kind: output, shape index: {0}]   ;;  %s4354_s20 = inlined_call_operand.hbm [shape: f32[1,1], index: 20, kind: output, shape index: {1}]  }
   0x1   :  { %4358 = sst [smem:[#allocation6_spill]] %s4334_s0 }
   0x2   :  { %4359 = sst [smem:[#allocation7_spill]] %s4335_s1 }
   0x3   :  { %4360 = sst [smem:[#allocation8_spill]] %s4336_s2 }
   0x4   :  { %4361 = sst [smem:[#allocation9_spill]] %s4337_s3 }
   0x5   :  { %4362 = sst [smem:[#allocation10_spill]] %s4338_s4 }
   0x6   :  { %s4363_s23 = sld [smem:[#allocation6_spill]]  ;;  %vm69_vm0 = vcmask 523264  }
   0xc   :  { %v65_v0 = vld [vmem:[%s4363_s23] sm:$0xff]  ;;  %v66_v1 = vld [vmem:[%s4363_s23 + $0x8] sm:$0xff] }
   0xd   :  { %26 = vsyncpa [#allocation4], 0  ;;  %v70_v2 = vsel %vm69_vm0, %v65_v0, 0.0  ;;  %v73_v3 = vsel %vm69_vm0, %v66_v1, 0.0  ;;  %s4364_s26 = sld [smem:[#allocation10_spill]]  ;;  %v3469_v19 = vmov 0.0   ;;  %v133_v47 = vlaneseq }
   0xe   :  { %71 = vadd.xlane.f32.xlu0 %v70_v2  ;;  %213 = vmatprep.mubr.f32.mxu0 %v3469_v19  ;;  %s4365_s30 = sld [smem:[#allocation8_spill]]  ;;  %vm3470_vm1 = vmmov 0   ;;  %v131_v50 = vld [vmem:[%s4339_s5] sm:$0x3]  ;;  %s3471_s24 = smov 64   ;;  %vm229_vm2 = vcmask 261120  }
   0xf   :  { %3095 = vmatprep.subr.mxu1 %v3469_v19  ;;  %s4366_s1 = sld [smem:[#allocation9_spill]]  ;;  %v3661_v48 = vshrl.u32 %v133_v47, 7  ;;  %3097 = vmatprep.mubr.msk.f32.mxu1 %vm3470_vm1, %v3469_v19  ;;  %vm397_vm3 = vcmask 64512   ;;  %s3472_s4 = smov 96   ;;  %vm912_vm4 = vcmask 523520  }
  0x10   :  { %s4367_s3 = sld [smem:[#allocation7_spill]]  ;;  %s3473_s29 = smov 32  }
  0x11   :  { %v135_v49 = vsub.s32 0, %v3661_v48  ;;  %v139_v57 = vsub.s32 1, %v3661_v48  ;;  %s3478_s27 = smov 126   ;;  %s3479_s28 = smov [#allocation3]  }
  0x12   :  { %74 = vadd.xlane.f32.xlu0 %v73_v3 }
  0x13   :  { %v130_v14 = vld [vmem:[%s4364_s26 + $0x78] sm:$0xff]  ;;  %v129_v15 = vld [vmem:[%s4364_s26 + $0x70] sm:$0xff]  ;;  %v128_v16 = vld [vmem:[%s4364_s26 + $0x68] sm:$0xff]  ;;  %v136_v51 = vrot.slane %v131_v50, %v135_v49  ;;  %v140_v59 = vrot.slane %v131_v50, %v139_v57 }
  0x14   :  { %165 = vmatprep.subr.mxu0 %v130_v14  ;;  %v127_v17 = vld [vmem:[%s4364_s26 + $0x60] sm:$0xff]  ;;  %v126_v18 = vld [vmem:[%s4364_s26 + $0x58] sm:$0xff]  ;;  %v125_v20 = vld [vmem:[%s4364_s26 + $0x50] sm:$0xff] }
  0x15   :  { %166 = vmatpush1.msra.mxu0 %v129_v15  ;;  %v124_v21 = vld [vmem:[%s4364_s26 + $0x48] sm:$0xff]  ;;  %v123_v22 = vld [vmem:[%s4364_s26 + $0x40] sm:$0xff]  ;;  %v122_v23 = vld [vmem:[%s4364_s26 + $0x38] sm:$0xff] }
  0x16   :  { %167 = vmatprep.subr.mxu0 %v128_v16  ;;  %v121_v24 = vld [vmem:[%s4364_s26 + $0x30] sm:$0xff]  ;;  %v120_v25 = vld [vmem:[%s4364_s26 + $0x28] sm:$0xff]  ;;  %v119_v26 = vld [vmem:[%s4364_s26 + $0x20] sm:$0xff] }
  0x17   :  { %168 = vmatpush1.msra.mxu0 %v127_v17  ;;  %v118_v27 = vld [vmem:[%s4364_s26 + $0x18] sm:$0xff]  ;;  %v117_v28 = vld [vmem:[%s4364_s26 + $0x10] sm:$0xff]  ;;  %v116_v29 = vld [vmem:[%s4364_s26 + $0x8] sm:$0xff] }
  0x18   :  { %169 = vmatprep.subr.mxu0 %v126_v18  ;;  %v115_v30 = vld [vmem:[%s4364_s26] sm:$0xff] }
  0x19   :  { %170 = vmatpush1.msra.mxu0 %v125_v20  ;;  %v2862_v38 = vld [vmem:[%s4365_s30] ss:$0 sm:$0xff]  ;;  %s2852_s30 = sshll.u32 %s3479_s28, 4  ;;  %s2853_s30 = int_to_ptr.vmem [resolvable:$true] %s2852_s30 }
  0x1a   :  { %171 = vmatprep.subr.mxu0 %v124_v21  ;;  %v2863_v40 = vld [vmem:[%s4366_s1] ss:$0 sm:$0xff]  ;;  %p3452_p1 = scmp.lt.s32.totalorder %s2853_s30, %s2853_s30 }
  0x1b   :  { %172 = vmatpush1.msra.mxu0 %v123_v22  ;;  %v3693_v63 = vld [vmem:[%s4367_s3] ss:$0 sm:$0xff] }
  0x1c   :  { %173 = vmatprep.subr.mxu0 %v122_v23 }
  0x1d   :  { %174 = vmatpush1.msra.mxu0 %v121_v24 }
  0x1e   :  { %175 = vmatprep.subr.mxu0 %v120_v25 }
  0x1f   :  { %176 = vmatpush1.msra.mxu0 %v119_v26 }
  0x20   :  { %177 = vmatprep.subr.mxu0 %v118_v27 }
  0x21   :  { %178 = vmatpush1.msra.mxu0 %v117_v28 }
  0x22   :  { %179 = vmatprep.subr.mxu0 %v116_v29 }
  0x23   :  { %180 = vmatpush1.msra.mxu0 %v115_v30 }
  0x97   :  { %v72_v4 = vpop.xlane.xlu0 %71 }
  0x98   :  { %v77_v5 = vmul.f32 0.015625, %v72_v4  ;;  %v3699_v4 = vld [vmem:[%s4367_s3 + $0x1] ss:$0 sm:$0xff] }
  0x9a   :  { %v79_v6 = vsub.f32 %v65_v0, %v77_v5 }
  0x9b   :  { %v75_v7 = vpop.xlane.xlu0 %74 }
  0x9c   :  { %v78_v8 = vmul.f32 0.015625, %v75_v7  ;;  %v81_v9 = vmul.f32 %v79_v6, %v79_v6 }
  0x9e   :  { %v80_v10 = vsub.f32 %v66_v1, %v78_v8  ;;  %v83_v11 = vsel %vm69_vm0, %v81_v9, 0.0 }
  0x9f   :  { %84 = vadd.xlane.f32.xlu1 %v83_v11 }
  0xa0   :  { %v82_v12 = vmul.f32 %v80_v10, %v80_v10 }
  0xa2   :  { %v86_v13 = vsel %vm69_vm0, %v82_v12, 0.0 }
  0xa3   :  { %87 = vadd.xlane.f32.xlu1 %v86_v13 }
 0x128   :  { %v85_v31 = vpop.xlane.xlu1 %84 }
 0x129   :  { %v89_v32 = vmul.f32 0.015625, %v85_v31 }
 0x12b   :  { %v91_v33 = vadd.f32 1e-12, %v89_v32 }
 0x12c   :  { %v88_v34 = vpop.xlane.xlu1 %87 }
 0x12d   :  { %3357 = vrsqrt.f32 %v91_v33  ;;  %v90_v35 = vmul.f32 0.015625, %v88_v34 }
 0x12f   :  { %v92_v36 = vadd.f32 1e-12, %v90_v35 }
 0x131   :  { %3359 = vrsqrt.f32 %v92_v36 }
 0x13a   :  { %v3358_v37 = vpop.eup %3357 }
 0x13b   :  { %v95_v39 = vmul.f32 %v3358_v37, %v79_v6 }
 0x13d   :  { %v103_v41 = vmul.f32 %v2862_v38, %v95_v39 }
 0x13e   :  { %v3360_v42 = vpop.eup %3359 }
 0x13f   :  { %v3651_v43 = vadd.f32 %v2863_v40, %v103_v41  ;;  %v96_v44 = vmul.f32 %v3360_v42, %v80_v10 }
 0x141   :  { %2864 = vmatmul.mubr.msk.f32.vlgmr.msra.gmra.mxu0 %vm69_vm0, %v3651_v43  ;;  %v104_v45 = vmul.f32 %v2862_v38, %v96_v44 }
 0x142   :  { %219 = vmatprep.mubr.f32.mxu0 %v3469_v19 }
 0x143   :  { %v3656_v46 = vadd.f32 %v2863_v40, %v104_v45 }
 0x145   :  { %2865 = vmatmul.mubr.msk.f32.gmra.mxu0 %vm69_vm0, %v3656_v46 }
 0x201   :  { %v215_v52 = vpop.f32.mrf.mxu0 }
 0x202   :  { %v216_v53 = vadd.f32 %v215_v52, %v136_v51 }
 0x203   :  { %v217_v54 = vpop.f32.mrf.mxu0 }
 0x204   :  { %227 = vrot.lane.b32.xlu0 %v216_v53, %s3471_s24  ;;  %v3683_v61 = vadd.f32 %v217_v54, %v140_v59 }
 0x205   :  { %v221_v55 = vpop.f32.mrf.mxu0 }
 0x206   :  { %v222_v56 = vadd.f32 %v221_v55, %v136_v51 }
 0x207   :  { %v223_v25 = vpop.f32.mrf.mxu0 }
 0x208   :  { %305 = vrot.lane.b32.xlu1 %v222_v56, %s3471_s24  ;;  %v224_v28 = vadd.f32 %v223_v25, %v140_v59 }
 0x276   :  { %v228_v58 = vpop.permute.xlu0 %227 }
 0x277   :  { %3096 = vmatpush3.xpose.msk.msra.mxu1 %vm229_vm2, %v228_v58 }
 0x278   :  { %3100 = vmatprep.subr.mxu1 %v3469_v19 }
 0x27a   :  { %v306_v60 = vpop.permute.xlu1 %305  ;;  %3098 = vmatmul.mubr.msk.f32.vlgmr.msra.gmra.mxu1 %vm229_vm2, %v216_v53 }
 0x27b   :  { %3101 = vmatpush3.xpose.msk.msra.mxu1 %vm229_vm2, %v306_v60  ;;  %3102 = vmatprep.mubr.msk.f32.mxu1 %vm3470_vm1, %v3469_v19 }
 0x27c   :  { %3105 = vmatprep.subr.mxu1 %v3469_v19 }
 0x27e   :  { %3103 = vmatmul.mubr.msk.f32.vlgmr.msra.gmra.mxu1 %vm229_vm2, %v222_v56 }
 0x27f   :  { %3106 = vmatpush3.msra.mxu1 %v3683_v61  ;;  %3107 = vmatprep.mubr.msk.f32.mxu1 %vm3470_vm1, %v3469_v19 }
 0x280   :  { %3110 = vmatprep.subr.mxu1 %v3469_v19 }
 0x33a   :  { %v300_v62 = vpop.f32.mrf.mxu1 }
 0x33b   :  { %v381_v0 = vmul.f32 0.17677669, %v300_v62 }
 0x33c   :  { %v3099_v1 = vpop.f32.mrf.mxu1 }
 0x33d   :  { %v395_v2 = vadd.f32 %v3693_v63, %v381_v0 }
 0x33e   :  { %v377_v3 = vpop.f32.mrf.mxu1 }
 0x33f   :  { %v382_v5 = vmul.f32 0.17677669, %v377_v3  ;;  %v398_v6 = vsel %vm397_vm3, %v395_v2, -inf }
 0x340   :  { %399 = vmax.xlane.f32.xlu1 %v398_v6  ;;  %v3104_v7 = vpop.f32.mrf.mxu1 }
 0x341   :  { %v396_v8 = vadd.f32 %v3699_v4, %v382_v5 }
 0x343   :  { %v401_v9 = vsel %vm397_vm3, %v396_v8, -inf }
 0x344   :  { %402 = vmax.xlane.f32.xlu0 %v401_v9 }
 0x351   :  { %568 = vrot.lane.b32.xlu1 %v216_v53, %s3472_s4 }
 0x355   :  { %648 = vrot.lane.b32.xlu1 %v222_v56, %s3473_s29 }
 0x3c9   :  { %v400_v10 = vpop.xlane.xlu1 %399 }
 0x3ca   :  { %v404_v11 = vsub.f32 %v395_v2, %v400_v10  ;;  %v923_v10 = vld [vmem:[%s4340_s6 + $0x30] sm:$0xff] }
 0x3cc   :  { %v406_v12 = vmul.f32 1.442695, %v404_v11  ;;  %v922_v11 = vld [vmem:[%s4340_s6 + $0x28] sm:$0xff] }
 0x3cd   :  { %v403_v13 = vpop.xlane.xlu0 %402  ;;  %v569_v21 = vpop.permute.xlu1 %568 }
 0x3ce   :  { %3361 = vpow2.f32 %v406_v12  ;;  %v405_v14 = vsub.f32 %v396_v8, %v403_v13  ;;  %v921_v12 = vld [vmem:[%s4340_s6 + $0x20] sm:$0xff]  ;;  %v920_v13 = vld [vmem:[%s4340_s6 + $0x18] sm:$0xff] }
 0x3d0   :  { %v408_v15 = vmul.f32 1.442695, %v405_v14  ;;  %v919_v14 = vld [vmem:[%s4340_s6 + $0x10] sm:$0xff] }
 0x3d1   :  { %v649_v22 = vpop.permute.xlu1 %648 }
 0x3d2   :  { %3363 = vpow2.f32 %v408_v15  ;;  %v918_v15 = vld [vmem:[%s4340_s6 + $0x8] sm:$0xff] }
 0x3db   :  { %v3362_v16 = vpop.eup %3361 }
 0x3dc   :  { %v410_v17 = vsel %vm397_vm3, %v3362_v16, 0.0 }
 0x3dd   :  { %411 = vadd.xlane.f32.xlu0 %v410_v17 }
 0x3df   :  { %v3364_v18 = vpop.eup %3363 }
 0x3e0   :  { %v413_v20 = vsel %vm397_vm3, %v3364_v18, 0.0 }
 0x3e1   :  { %414 = vadd.xlane.f32.xlu1 %v413_v20 }
 0x3f2   :  { %646 = vrot.lane.b32.xlu1 %v222_v56, %s3472_s4 }
 0x3f3   :  { %570 = vrot.lane.b32.xlu0 %v216_v53, %s3473_s29 }
 0x466   :  { %v412_v23 = vpop.xlane.xlu0 %411 }
 0x467   :  { %3365 = vrcp.f32 %v412_v23 }
 0x46a   :  { %v415_v24 = vpop.xlane.xlu1 %414  ;;  %v571_v31 = vpop.permute.xlu0 %570 }
 0x46b   :  { %3367 = vrcp.f32 %v415_v24 }
 0x46e   :  { %v647_v32 = vpop.permute.xlu1 %646 }
 0x474   :  { %v3366_v26 = vpop.eup %3365 }
 0x475   :  { %v418_v27 = vmul.f32 %v3366_v26, %v3362_v16  ;;  %v917_v16 = vld [vmem:[%s4340_s6] sm:$0xff] }
 0x476   :  { %v2880_v26 = vld [vmem:[%s4341_s7] ss:$0 sm:$0xff] }
 0x477   :  { %3108 = vmatmul.mubr.msk.f32.vlgmr.msra.gmra.mxu1 %vm397_vm3, %v418_v27 }
 0x478   :  { %v3368_v29 = vpop.eup %3367  ;;  %3111 = vmatpush3.msra.mxu1 %v224_v28  ;;  %3112 = vmatprep.mubr.msk.f32.mxu1 %vm3470_vm1, %v3469_v19 }
 0x479   :  { %3115 = vmatprep.subr.mxu1 %v3469_v19  ;;  %v419_v30 = vmul.f32 %v3368_v29, %v3364_v18 }
 0x47b   :  { %3113 = vmatmul.mubr.msk.f32.vlgmr.msra.gmra.mxu1 %vm397_vm3, %v419_v30 }
 0x47c   :  { %3116 = vmatpush3.xpose.msk.msra.mxu1 %vm229_vm2, %v571_v31  ;;  %3117 = vmatprep.mubr.msk.f32.mxu1 %vm3470_vm1, %v3469_v19 }
 0x47d   :  { %3120 = vmatprep.subr.mxu1 %v3469_v19 }
 0x47f   :  { %3118 = vmatmul.mubr.msk.f32.vlgmr.msra.gmra.mxu1 %vm229_vm2, %v569_v21 }
 0x480   :  { %3121 = vmatpush3.xpose.msk.msra.mxu1 %vm229_vm2, %v649_v22  ;;  %3122 = vmatprep.mubr.msk.f32.mxu1 %vm3470_vm1, %v3469_v19 }
 0x481   :  { %3125 = vmatprep.subr.mxu1 %v3469_v19 }
 0x483   :  { %3123 = vmatmul.mubr.msk.f32.vlgmr.msra.gmra.mxu1 %vm229_vm2, %v647_v32 }
 0x484   :  { %3127 = vmatprep.mubr.msk.f32.mxu1 %vm3470_vm1, %v3469_v19 }
 0x537   :  { %v489_v33 = vpop.f32.mrf.mxu1 }
 0x538   :  { %566 = vst.msk [vmem:[#allocation2] sm:$0xff] %vm229_vm2, %v489_v33 }
 0x539   :  { %v3109_v34 = vpop.f32.mrf.mxu1 }
 0x53b   :  { %v562_v35 = vpop.f32.mrf.mxu1 }
 0x53c   :  { %567 = vst.msk [vmem:[#allocation2 + $0x8] sm:$0xff] %vm229_vm2, %v562_v35 }
 0x53d   :  { %v3114_v36 = vpop.f32.mrf.mxu1 }
 0x53f   :  { %v642_v37 = vpop.f32.mrf.mxu1 }
 0x540   :  { %v724_v38 = vmul.f32 0.17677669, %v642_v37 }
 0x541   :  { %v3119_v39 = vpop.f32.mrf.mxu1 }
 0x542   :  { %v726_v40 = vadd.f32 %v3693_v63, %v724_v38 }
 0x543   :  { %v720_v41 = vpop.f32.mrf.mxu1 }
 0x544   :  { %v725_v42 = vmul.f32 0.17677669, %v720_v41  ;;  %v728_v44 = vsel %vm397_vm3, %v726_v40, -inf }
 0x545   :  { %729 = vmax.xlane.f32.xlu0 %v728_v44  ;;  %v3124_v45 = vpop.f32.mrf.mxu1 }
 0x546   :  { %v727_v50 = vadd.f32 %v3699_v4, %v725_v42  ;;  %v1065_v45 = vld [vmem:[%s4344_s10 + $0x30] sm:$0xff] }
 0x548   :  { %v731_v51 = vsel %vm397_vm3, %v727_v50, -inf }
 0x549   :  { %732 = vmax.xlane.f32.xlu1 %v731_v51  ;;  %v1063_v51 = vld [vmem:[%s4344_s10 + $0x20] sm:$0xff] }
 0x55a   :  { %828 = vrot.lane.b32.xlu1 %v224_v28, %s3472_s4 }
 0x5ce   :  { %v730_v52 = vpop.xlane.xlu0 %729 }
 0x5cf   :  { %v734_v53 = vsub.f32 %v726_v40, %v730_v52  ;;  %v1062_v52 = vld [vmem:[%s4344_s10 + $0x18] sm:$0xff] }
 0x5d1   :  { %v736_v54 = vmul.f32 1.442695, %v734_v53  ;;  %v1061_v53 = vld [vmem:[%s4344_s10 + $0x10] sm:$0xff] }
 0x5d2   :  { %v733_v55 = vpop.xlane.xlu1 %732 }
 0x5d3   :  { %3369 = vpow2.f32 %v736_v54  ;;  %v735_v56 = vsub.f32 %v727_v50, %v733_v55  ;;  %v1064_v50 = vld [vmem:[%s4344_s10 + $0x28] sm:$0xff]  ;;  %v1059_v55 = vld [vmem:[%s4344_s10] sm:$0xff] }
 0x5d4   :  { %v1060_v54 = vld [vmem:[%s4344_s10 + $0x8] sm:$0xff] }
 0x5d5   :  { %v738_v58 = vmul.f32 1.442695, %v735_v56 }
 0x5d6   :  { %v829_v7 = vpop.permute.xlu1 %828 }
 0x5d7   :  { %3371 = vpow2.f32 %v738_v58 }
 0x5e0   :  { %v3370_v59 = vpop.eup %3369 }
 0x5e1   :  { %v740_v60 = vsel %vm397_vm3, %v3370_v59, 0.0 }
 0x5e2   :  { %741 = vadd.xlane.f32.xlu0 %v740_v60 }
 0x5e4   :  { %v3372_v62 = vpop.eup %3371 }
 0x5e5   :  { %v743_v0 = vsel %vm397_vm3, %v3372_v62, 0.0 }
 0x5e6   :  { %744 = vadd.xlane.f32.xlu0 %v743_v0 }
 0x5fc   :  { %751 = vrot.lane.b32.xlu0 %v3683_v61, %s3472_s4  ;;  %v924_v61 = vld [vmem:[%s4340_s6 + $0x38] sm:$0xff] }
 0x66b   :  { %v742_v1 = vpop.xlane.xlu0 %741 }
 0x66c   :  { %3373 = vrcp.f32 %v742_v1 }
 0x66f   :  { %v745_v2 = vpop.xlane.xlu0 %744 }
 0x670   :  { %3375 = vrcp.f32 %v745_v2  ;;  %v2883_v2 = vld [vmem:[%s4342_s8] ss:$0 sm:$0xff] }
 0x673   :  { %v752_v3 = vpop.permute.xlu0 %751 }
 0x674   :  { %3126 = vmatpush3.msra.mxu1 %v752_v3 }
 0x675   :  { %3130 = vmatprep.subr.mxu1 %v3469_v19 }
 0x679   :  { %v3374_v5 = vpop.eup %3373 }
 0x67a   :  { %v748_v6 = vmul.f32 %v3374_v5, %v3370_v59  ;;  %v2884_v5 = vld [vmem:[%s4343_s9] ss:$0 sm:$0xff] }
 0x67c   :  { %3128 = vmatmul.mubr.msk.f32.vlgmr.msra.gmra.mxu1 %vm397_vm3, %v748_v6 }
 0x67d   :  { %v3376_v8 = vpop.eup %3375  ;;  %3131 = vmatpush3.msra.mxu1 %v829_v7  ;;  %3132 = vmatprep.mubr.msk.f32.mxu1 %vm3470_vm1, %v3469_v19 }
 0x67e   :  { %v749_v9 = vmul.f32 %v3376_v8, %v3372_v62  ;;  %3135 = vmatprep.subr.mxu1 %v924_v61 }
 0x680   :  { %3133 = vmatmul.mubr.msk.f32.vlgmr.msra.gmra.mxu1 %vm397_vm3, %v749_v9 }
 0x681   :  { %3136 = vmatpush3.msra.mxu1 %v924_v61 }
 0x682   :  { %3137 = vmatprep.subr.mxu1 %v923_v10 }
 0x683   :  { %3138 = vmatpush3.msra.mxu1 %v923_v10 }
 0x684   :  { %3139 = vmatprep.subr.mxu1 %v922_v11 }
 0x685   :  { %3140 = vmatpush3.msra.mxu1 %v922_v11  ;;  %v1188_v11 = vld [vmem:[%s4346_s12 + $0x78] sm:$0xff] }
 0x686   :  { %3141 = vmatprep.subr.mxu1 %v921_v12 }
 0x687   :  { %3142 = vmatpush3.msra.mxu1 %v921_v12  ;;  %v1187_v12 = vld [vmem:[%s4346_s12 + $0x70] sm:$0xff] }
 0x688   :  { %3143 = vmatprep.subr.mxu1 %v920_v13 }
 0x689   :  { %3144 = vmatpush3.msra.mxu1 %v920_v13  ;;  %v1186_v13 = vld [vmem:[%s4346_s12 + $0x68] sm:$0xff] }
 0x68a   :  { %3145 = vmatprep.subr.mxu1 %v919_v14 }
 0x68b   :  { %3146 = vmatpush3.msra.mxu1 %v919_v14  ;;  %v1185_v14 = vld [vmem:[%s4346_s12 + $0x60] sm:$0xff] }
 0x68c   :  { %3147 = vmatprep.subr.mxu1 %v918_v15 }
 0x68d   :  { %3148 = vmatpush3.msra.mxu1 %v918_v15  ;;  %v1184_v15 = vld [vmem:[%s4346_s12 + $0x58] sm:$0xff] }
 0x68e   :  { %3149 = vmatprep.subr.mxu1 %v917_v16 }
 0x68f   :  { %3150 = vmatpush3.msra.mxu1 %v917_v16  ;;  %v1183_v16 = vld [vmem:[%s4346_s12 + $0x50] sm:$0xff] }
 0x690   :  { %3173 = vmatprep.subr.mxu1 %v1188_v11 }
 0x73c   :  { %v823_v17 = vpop.f32.mrf.mxu1 }
 0x73d   :  { %906 = vrot.lane.b32.xlu1 %v823_v17, %s3473_s29  ;;  %v1182_v17 = vld [vmem:[%s4346_s12 + $0x48] sm:$0xff] }
 0x73e   :  { %v3129_v18 = vpop.f32.mrf.mxu1 }
 0x73f   :  { %v1181_v18 = vld [vmem:[%s4346_s12 + $0x40] sm:$0xff] }
 0x740   :  { %v900_v20 = vpop.f32.mrf.mxu1 }
 0x741   :  { %908 = vrot.lane.b32.xlu1 %v900_v20, %s3473_s29  ;;  %v1180_v20 = vld [vmem:[%s4346_s12 + $0x38] sm:$0xff] }
 0x742   :  { %v3134_v21 = vpop.f32.mrf.mxu1 }
 0x743   :  { %v1179_v21 = vld [vmem:[%s4346_s12 + $0x30] sm:$0xff] }
 0x7af   :  { %v907_v22 = vpop.permute.xlu1 %906 }
 0x7b0   :  { %913 = vst.msk [vmem:[#allocation2] sm:$0xff] %vm912_vm4, %v907_v22  ;;  %v1178_v22 = vld [vmem:[%s4346_s12 + $0x28] sm:$0xff] }
 0x7b3   :  { %v909_v23 = vpop.permute.xlu1 %908 }
 0x7b4   :  { %914 = vst.msk [vmem:[#allocation2 + $0x8] sm:$0xff] %vm912_vm4, %v909_v23  ;;  %v1177_v23 = vld [vmem:[%s4346_s12 + $0x20] sm:$0xff] }
 0x7b7   :  { %v915_v24 = vld [vmem:[#allocation2] sm:$0xff] }
 0x7b8   :  { %3151 = vmatprep.mubr.msk.f32.mxu1 %vm69_vm0, %v915_v24  ;;  %v1176_v24 = vld [vmem:[%s4346_s12 + $0x18] sm:$0xff] }
 0x7bb   :  { %v916_v25 = vld [vmem:[#allocation2 + $0x8] sm:$0xff] }
 0x7bc   :  { %3152 = vmatmul.mubr.msk.f32.vlgmr.msra.gmra.mxu1 %vm69_vm0, %v916_v25  ;;  %v1175_v25 = vld [vmem:[%s4346_s12 + $0x10] sm:$0xff] }
 0x7bd   :  { %3174 = vmatpush3.msra.mxu1 %v1188_v11 }
 0x7be   :  { %3175 = vmatprep.subr.mxu1 %v1187_v12 }
 0x7bf   :  { %3176 = vmatpush3.msra.mxu1 %v1187_v12 }
 0x7c0   :  { %3177 = vmatprep.subr.mxu1 %v1186_v13 }
 0x7c1   :  { %3178 = vmatpush3.msra.mxu1 %v1186_v13  ;;  %v2905_v13 = vld [vmem:[%s4364_s26 + $0xf0] sm:$0xff] }
 0x7c2   :  { %3179 = vmatprep.subr.mxu1 %v1185_v14 }
 0x7c3   :  { %3180 = vmatpush3.msra.mxu1 %v1185_v14  ;;  %v2904_v14 = vld [vmem:[%s4364_s26 + $0xe8] sm:$0xff] }
 0x7c4   :  { %3181 = vmatprep.subr.mxu1 %v1184_v15 }
 0x7c5   :  { %3182 = vmatpush3.msra.mxu1 %v1184_v15  ;;  %v2903_v15 = vld [vmem:[%s4364_s26 + $0xe0] sm:$0xff] }
 0x7c6   :  { %3183 = vmatprep.subr.mxu1 %v1183_v16 }
 0x7c7   :  { %3184 = vmatpush3.msra.mxu1 %v1183_v16  ;;  %v2902_v16 = vld [vmem:[%s4364_s26 + $0xd8] sm:$0xff] }
 0x7c8   :  { %3185 = vmatprep.subr.mxu1 %v1182_v17 }
 0x7c9   :  { %3186 = vmatpush3.msra.mxu1 %v1182_v17  ;;  %v2901_v17 = vld [vmem:[%s4364_s26 + $0xd0] sm:$0xff] }
 0x7ca   :  { %3187 = vmatprep.subr.mxu1 %v1181_v18 }
 0x7cb   :  { %3188 = vmatpush3.msra.mxu1 %v1181_v18  ;;  %v2900_v18 = vld [vmem:[%s4364_s26 + $0xc8] sm:$0xff] }
 0x7cc   :  { %3189 = vmatprep.subr.mxu1 %v1180_v20 }
 0x7cd   :  { %3190 = vmatpush3.msra.mxu1 %v1180_v20  ;;  %v2899_v20 = vld [vmem:[%s4364_s26 + $0xc0] sm:$0xff] }
 0x7ce   :  { %3191 = vmatprep.subr.mxu1 %v1179_v21 }
 0x7cf   :  { %3192 = vmatpush3.msra.mxu1 %v1179_v21  ;;  %v2898_v21 = vld [vmem:[%s4364_s26 + $0xb8] sm:$0xff] }
 0x7d0   :  { %3193 = vmatprep.subr.mxu1 %v1178_v22 }
 0x7d1   :  { %3194 = vmatpush3.msra.mxu1 %v1178_v22  ;;  %v2897_v22 = vld [vmem:[%s4364_s26 + $0xb0] sm:$0xff] }
 0x7d2   :  { %3195 = vmatprep.subr.mxu1 %v1177_v23 }
 0x7d3   :  { %3196 = vmatpush3.msra.mxu1 %v1177_v23  ;;  %v2896_v23 = vld [vmem:[%s4364_s26 + $0xa8] sm:$0xff] }
 0x7d4   :  { %3197 = vmatprep.subr.mxu1 %v1176_v24 }
 0x7d5   :  { %3198 = vmatpush3.msra.mxu1 %v1176_v24  ;;  %v2895_v24 = vld [vmem:[%s4364_s26 + $0xa0] sm:$0xff] }
 0x7d6   :  { %3199 = vmatprep.subr.mxu1 %v1175_v25 }
 0x7d7   :  { %3200 = vmatpush3.msra.mxu1 %v1175_v25  ;;  %v2894_v25 = vld [vmem:[%s4364_s26 + $0x98] sm:$0xff] }
 0x87c   :  { %v3153_v27 = vpop.f32.mrf.mxu1 }
 0x87d   :  { %v1010_v28 = vadd.f32 %v3153_v27, %v2880_v26  ;;  %v1173_v27 = vld [vmem:[%s4346_s12] sm:$0xff] }
 0x87e   :  { %v1004_v29 = vpop.f32.mrf.mxu1 }
 0x87f   :  { %v1005_v30 = vadd.f32 %v2880_v26, %v1004_v29  ;;  %v1014_v31 = vadd.f32 %v1010_v28, %v3656_v46  ;;  %v1174_v26 = vld [vmem:[%s4346_s12 + $0x8] sm:$0xff]  ;;  %v2885_v28 = vld [vmem:[%s4345_s11] ss:$0 sm:$0xff] }
 0x880   :  { %3201 = vmatprep.subr.mxu1 %v1174_v26 }
 0x881   :  { %v1020_v32 = vsel %vm69_vm0, %v1014_v31, 0.0  ;;  %v1013_v33 = vadd.f32 %v1005_v30, %v3651_v43  ;;  %v1066_v43 = vld [vmem:[%s4344_s10 + $0x38] sm:$0xff]  ;;  %3202 = vmatpush3.msra.mxu1 %v1174_v26  ;;  %v2893_v26 = vld [vmem:[%s4364_s26 + $0x90] sm:$0xff] }
 0x882   :  { %1021 = vadd.xlane.f32.xlu1 %v1020_v32  ;;  %3154 = vmatprep.subr.mxu0 %v1066_v43 }
 0x883   :  { %v1017_v34 = vsel %vm69_vm0, %v1013_v33, 0.0  ;;  %3155 = vmatpush3.msra.mxu0 %v1066_v43  ;;  %3203 = vmatprep.subr.mxu1 %v1173_v27 }
 0x884   :  { %1018 = vadd.xlane.f32.xlu0 %v1017_v34  ;;  %3156 = vmatprep.subr.mxu0 %v1065_v45 }
 0x885   :  { %3157 = vmatpush3.msra.mxu0 %v1065_v45  ;;  %3204 = vmatpush3.msra.mxu1 %v1173_v27  ;;  %v2892_v27 = vld [vmem:[%s4364_s26 + $0x88] sm:$0xff] }
 0x886   :  { %3158 = vmatprep.subr.mxu0 %v1064_v50  ;;  %3223 = vmatprep.subr.mxu1 %v3469_v19 }
 0x887   :  { %3159 = vmatpush3.msra.mxu0 %v1064_v50 }
 0x888   :  { %3160 = vmatprep.subr.mxu0 %v1063_v51 }
 0x889   :  { %3161 = vmatpush3.msra.mxu0 %v1063_v51 }
 0x88a   :  { %3162 = vmatprep.subr.mxu0 %v1062_v52 }
 0x88b   :  { %3163 = vmatpush3.msra.mxu0 %v1062_v52 }
 0x88c   :  { %3164 = vmatprep.subr.mxu0 %v1061_v53 }
 0x88d   :  { %3165 = vmatpush3.msra.mxu0 %v1061_v53 }
 0x88e   :  { %3166 = vmatprep.subr.mxu0 %v1060_v54 }
 0x88f   :  { %3167 = vmatpush3.msra.mxu0 %v1060_v54  ;;  %v2888_v54 = vld [vmem:[%s4347_s13] ss:$0 sm:$0xff] }
 0x890   :  { %3168 = vmatprep.subr.mxu0 %v1059_v55 }
 0x891   :  { %3169 = vmatpush3.msra.mxu0 %v1059_v55 }
 0x90b   :  { %v1022_v35 = vpop.xlane.xlu1 %1021 }
 0x90c   :  { %v1024_v36 = vmul.f32 0.015625, %v1022_v35 }
 0x90d   :  { %v1019_v37 = vpop.xlane.xlu0 %1018 }
 0x90e   :  { %v1023_v38 = vmul.f32 0.015625, %v1019_v37  ;;  %v1026_v39 = vsub.f32 %v1014_v31, %v1024_v36 }
 0x910   :  { %v1025_v40 = vsub.f32 %v1013_v33, %v1023_v38  ;;  %v1028_v44 = vmul.f32 %v1026_v39, %v1026_v39 }
 0x912   :  { %v1027_v41 = vmul.f32 %v1025_v40, %v1025_v40  ;;  %v1032_v46 = vsel %vm69_vm0, %v1028_v44, 0.0 }
 0x914   :  { %v1029_v42 = vsel %vm69_vm0, %v1027_v41, 0.0 }
 0x915   :  { %1030 = vadd.xlane.f32.xlu0 %v1029_v42 }
 0x919   :  { %1033 = vadd.xlane.f32.xlu0 %v1032_v46 }
 0x99e   :  { %v1031_v56 = vpop.xlane.xlu0 %1030 }
 0x99f   :  { %v1035_v58 = vmul.f32 0.015625, %v1031_v56 }
 0x9a1   :  { %v1037_v59 = vadd.f32 1e-12, %v1035_v58 }
 0x9a2   :  { %v1034_v60 = vpop.xlane.xlu0 %1033 }
 0x9a3   :  { %3377 = vrsqrt.f32 %v1037_v59  ;;  %v1036_v62 = vmul.f32 0.015625, %v1034_v60 }
 0x9a5   :  { %v1038_v0 = vadd.f32 1e-12, %v1036_v62 }
 0x9a7   :  { %3379 = vrsqrt.f32 %v1038_v0 }
 0x9b0   :  { %v3378_v1 = vpop.eup %3377 }
 0x9b1   :  { %v1041_v3 = vmul.f32 %v3378_v1, %v1025_v40 }
 0x9b3   :  { %v1049_v6 = vmul.f32 %v2883_v2, %v1041_v3 }
 0x9b4   :  { %v3380_v7 = vpop.eup %3379 }
 0x9b5   :  { %v1042_v8 = vmul.f32 %v3380_v7, %v1026_v39  ;;  %v3812_v9 = vadd.f32 %v2884_v5, %v1049_v6 }
 0x9b7   :  { %v1050_v61 = vmul.f32 %v2883_v2, %v1042_v8  ;;  %3170 = vmatprep.mubr.msk.f32.mxu0 %vm69_vm0, %v3812_v9 }
 0x9b9   :  { %v3816_v10 = vadd.f32 %v2884_v5, %v1050_v61 }
 0x9bb   :  { %3171 = vmatmul.mubr.msk.f32.vlgmr.msra.gmra.mxu0 %vm69_vm0, %v3816_v10 }
 0x9bc   :  { %1417 = vmatprep.mubr.f32.mxu0 %v3469_v19 }
 0xa7b   :  { %v3172_v29 = vpop.f32.mrf.mxu0 }
 0xa7c   :  { %v1152_v30 = vadd.f32 %v3172_v29, %v2885_v28 }
 0xa7d   :  { %v1146_v31 = vpop.f32.mrf.mxu0 }
 0xa7e   :  { %v1156_v32 = vmul.f32 %v1152_v30, %v1152_v30  ;;  %v1147_v33 = vadd.f32 %v2885_v28, %v1146_v31  ;;  %v2891_v28 = vld [vmem:[%s4364_s26 + $0x80] sm:$0xff] }
 0xa80   :  { %v1158_v34 = vmul.f32 %v1156_v32, %v1152_v30  ;;  %v1155_v35 = vmul.f32 %v1147_v33, %v1147_v33 }
 0xa82   :  { %v1160_v36 = vmul.f32 0.044715, %v1158_v34  ;;  %v1157_v37 = vmul.f32 %v1155_v35, %v1147_v33 }
 0xa84   :  { %v1162_v38 = vadd.f32 %v1160_v36, %v1152_v30  ;;  %v1159_v39 = vmul.f32 0.044715, %v1157_v37 }
 0xa86   :  { %v1164_v40 = vmul.f32 0.7978846, %v1162_v38  ;;  %v1161_v41 = vadd.f32 %v1159_v39, %v1147_v33  ;;  %v2889_v39 = vld [vmem:[%s4348_s14] ss:$0 sm:$0xff] }
 0xa88   :  { %3381 = vtanh.f32 %v1164_v40  ;;  %v1163_v42 = vmul.f32 0.7978846, %v1161_v41  ;;  %v2890_v41 = vld [vmem:[%s4349_s15] ss:$0 sm:$0xff] }
 0xa8a   :  { %3383 = vtanh.f32 %v1163_v42 }
 0xa95   :  { %v3382_v44 = vpop.eup %3381 }
 0xa96   :  { %v1168_v46 = vadd.f32 1.0, %v3382_v44 }
 0xa97   :  { %v3384_v43 = vpop.eup %3383 }
 0xa98   :  { %v1167_v45 = vadd.f32 1.0, %v3384_v43  ;;  %v1170_v50 = vmul.f32 0.5, %v1168_v46  ;;  %v2907_v43 = vld [vmem:[%s4339_s5 + $0x2] sm:$0x3]  ;;  %s3447_s5 = scalar_lea.vmem %s2853_s30, 16 }
 0xa99   :  { %p3448_p0 = scmp.ne.s32.totalorder %s2853_s30, %s3447_s5 }
 0xa9a   :  { %v1169_v51 = vmul.f32 0.5, %v1167_v45  ;;  %v1172_v53 = vmul.f32 %v1170_v50, %v1152_v30  ;;  %v1340_v45 = vrot.slane %v2907_v43, %v135_v49  ;;  %v1344_v50 = vrot.slane %v2907_v43, %v139_v57 }
 0xa9c   :  { %v1171_v52 = vmul.f32 %v1169_v51, %v1147_v33 }
 0xa9e   :  { %3205 = vmatprep.mubr.f32.mxu1 %v1171_v52 }
 0xa9f   :  { %3206 = vmatmul.mubr.f32.vlgmr.msra.gmra.mxu1 %v1172_v53 }
 0xaa0   :  { %3225 = vmatprep.mubr.msk.f32.mxu1 %vm3470_vm1, %v3469_v19 }
 0xb5f   :  { %v3207_v55 = vpop.f32.mrf.mxu1 }
 0xb60   :  { %v1268_v56 = vadd.f32 %v3207_v55, %v2888_v54 }
 0xb61   :  { %v1262_v58 = vpop.f32.mrf.mxu1 }
 0xb62   :  { %v1263_v59 = vadd.f32 %v2888_v54, %v1262_v58  ;;  %v1272_v60 = vadd.f32 %v1268_v56, %v3816_v10 }
 0xb64   :  { %v1278_v62 = vsel %vm69_vm0, %v1272_v60, 0.0  ;;  %v1271_v0 = vadd.f32 %v1263_v59, %v3812_v9  ;;  %v2906_v9 = vld [vmem:[%s4364_s26 + $0xf8] sm:$0xff] }
 0xb65   :  { %1279 = vadd.xlane.f32.xlu1 %v1278_v62  ;;  %1369 = vmatprep.subr.mxu0 %v2906_v9 }
 0xb66   :  { %v1275_v1 = vsel %vm69_vm0, %v1271_v0, 0.0  ;;  %1370 = vmatpush1.msra.mxu0 %v2905_v13 }
 0xb67   :  { %1276 = vadd.xlane.f32.xlu0 %v1275_v1  ;;  %1371 = vmatprep.subr.mxu0 %v2904_v14 }
 0xb68   :  { %1372 = vmatpush1.msra.mxu0 %v2903_v15 }
 0xb69   :  { %1373 = vmatprep.subr.mxu0 %v2902_v16 }
 0xb6a   :  { %1374 = vmatpush1.msra.mxu0 %v2901_v17 }
 0xb6b   :  { %1375 = vmatprep.subr.mxu0 %v2900_v18 }
 0xb6c   :  { %1376 = vmatpush1.msra.mxu0 %v2899_v20 }
 0xb6d   :  { %1377 = vmatprep.subr.mxu0 %v2898_v21 }
 0xb6e   :  { %1378 = vmatpush1.msra.mxu0 %v2897_v22 }
 0xb6f   :  { %1379 = vmatprep.subr.mxu0 %v2896_v23 }
 0xb70   :  { %1380 = vmatpush1.msra.mxu0 %v2895_v24 }
 0xb71   :  { %1381 = vmatprep.subr.mxu0 %v2894_v25 }
 0xb72   :  { %1382 = vmatpush1.msra.mxu0 %v2893_v26 }
 0xb73   :  { %1383 = vmatprep.subr.mxu0 %v2892_v27 }
 0xb74   :  { %1384 = vmatpush1.msra.mxu0 %v2891_v28 }
 0xb75   :  { %3208 = vmatprep.subr.mxu0 %v3469_v19 }
 0xbee   :  { %v1280_v2 = vpop.xlane.xlu1 %1279 }
 0xbef   :  { %v1282_v3 = vmul.f32 0.015625, %v1280_v2 }
 0xbf0   :  { %v1277_v5 = vpop.xlane.xlu0 %1276 }
 0xbf1   :  { %v1284_v6 = vsub.f32 %v1272_v60, %v1282_v3  ;;  %v1281_v7 = vmul.f32 0.015625, %v1277_v5 }
 0xbf3   :  { %v1283_v8 = vsub.f32 %v1271_v0, %v1281_v7  ;;  %v1286_v61 = vmul.f32 %v1284_v6, %v1284_v6 }
 0xbf5   :  { %v1290_v11 = vsel %vm69_vm0, %v1286_v61, 0.0  ;;  %v1285_v12 = vmul.f32 %v1283_v8, %v1283_v8 }
 0xbf6   :  { %1291 = vadd.xlane.f32.xlu1 %v1290_v11 }
 0xbf7   :  { %v1287_v10 = vsel %vm69_vm0, %v1285_v12, 0.0 }
 0xbf8   :  { %1288 = vadd.xlane.f32.xlu0 %v1287_v10 }
 0xc7f   :  { %v1292_v29 = vpop.xlane.xlu1 %1291 }
 0xc80   :  { %v1294_v30 = vmul.f32 0.015625, %v1292_v29 }
 0xc81   :  { %v1289_v31 = vpop.xlane.xlu0 %1288 }
 0xc82   :  { %v1296_v32 = vadd.f32 1e-12, %v1294_v30  ;;  %v1293_v33 = vmul.f32 0.015625, %v1289_v31 }
 0xc84   :  { %3385 = vrsqrt.f32 %v1296_v32  ;;  %v1295_v34 = vadd.f32 1e-12, %v1293_v33 }
 0xc86   :  { %3387 = vrsqrt.f32 %v1295_v34 }
 0xc91   :  { %v3386_v35 = vpop.eup %3385 }
 0xc92   :  { %v1300_v38 = vmul.f32 %v3386_v35, %v1284_v6 }
 0xc93   :  { %v3388_v36 = vpop.eup %3387 }
 0xc94   :  { %v1299_v37 = vmul.f32 %v3388_v36, %v1283_v8  ;;  %v1308_v44 = vmul.f32 %v2889_v39, %v1300_v38 }
 0xc96   :  { %v1307_v40 = vmul.f32 %v2889_v39, %v1299_v37  ;;  %v3944_v46 = vadd.f32 %v2890_v41, %v1308_v44 }
 0xc98   :  { %v3939_v42 = vadd.f32 %v2890_v41, %v1307_v40 }
 0xc9a   :  { %2908 = vmatmul.mubr.msk.f32.vlgmr.msra.gmra.mxu0 %vm69_vm0, %v3939_v42 }
 0xc9b   :  { %1423 = vmatprep.mubr.f32.mxu0 %v3469_v19 }
 0xc9e   :  { %2909 = vmatmul.mubr.msk.f32.gmra.mxu0 %vm69_vm0, %v3944_v46 }
 0xc9f   :  { %3210 = vmatprep.mubr.msk.f32.mxu0 %vm3470_vm1, %v3469_v19 }
 0xd5a   :  { %v1419_v51 = vpop.f32.mrf.mxu0 }
 0xd5b   :  { %v1420_v52 = vadd.f32 %v1419_v51, %v1340_v45 }
 0xd5c   :  { %v1421_v53 = vpop.f32.mrf.mxu0 }
 0xd5d   :  { %v3957_v54 = vadd.f32 %v1421_v53, %v1344_v50  ;;  %1431 = vrot.lane.b32.xlu0 %v1420_v52, %s3471_s24 }
 0xd5e   :  { %v1425_v55 = vpop.f32.mrf.mxu0 }
 0xd5f   :  { %v1426_v56 = vadd.f32 %v1425_v55, %v1340_v45 }
 0xd60   :  { %v1427_v58 = vpop.f32.mrf.mxu0 }
 0xd61   :  { %v3960_v59 = vadd.f32 %v1427_v58, %v1344_v50  ;;  %1508 = vrot.lane.b32.xlu1 %v1426_v56, %s3471_s24 }
 0xd63   :  { %3224 = vmatpush3.msra.mxu1 %v3960_v59 }
 0xd64   :  { %3233 = vmatprep.subr.mxu1 %v3469_v19 }
 0xdcf   :  { %v1432_v48 = vpop.permute.xlu0 %1431 }
 0xdd0   :  { %3209 = vmatpush3.xpose.msk.msra.mxu0 %vm229_vm2, %v1432_v48 }
 0xdd1   :  { %3213 = vmatprep.subr.mxu0 %v3469_v19 }
 0xdd3   :  { %v1509_v49 = vpop.permute.xlu1 %1508  ;;  %3211 = vmatmul.mubr.msk.f32.vlgmr.msra.gmra.mxu0 %vm229_vm2, %v1420_v52 }
 0xdd4   :  { %3214 = vmatpush3.xpose.msk.msra.mxu0 %vm229_vm2, %v1509_v49  ;;  %3215 = vmatprep.mubr.msk.f32.mxu0 %vm3470_vm1, %v3469_v19 }
 0xdd5   :  { %3218 = vmatprep.subr.mxu0 %v3469_v19 }
 0xdd7   :  { %3216 = vmatmul.mubr.msk.f32.vlgmr.msra.gmra.mxu0 %vm229_vm2, %v1426_v56 }
 0xdd8   :  { %3219 = vmatpush3.msra.mxu0 %v3957_v54  ;;  %3220 = vmatprep.mubr.msk.f32.mxu0 %vm3470_vm1, %v3469_v19 }
 0xdd9   :  { %3228 = vmatprep.subr.mxu0 %v3469_v19 }
 0xe93   :  { %v1503_v57 = vpop.f32.mrf.mxu0 }
 0xe94   :  { %v1584_v60 = vmul.f32 0.17677669, %v1503_v57 }
 0xe95   :  { %v3212_v62 = vpop.f32.mrf.mxu0 }
 0xe96   :  { %v1586_v0 = vadd.f32 %v3693_v63, %v1584_v60 }
 0xe97   :  { %v1580_v1 = vpop.f32.mrf.mxu0 }
 0xe98   :  { %v1585_v2 = vmul.f32 0.17677669, %v1580_v1  ;;  %v1588_v3 = vsel %vm397_vm3, %v1586_v0, -inf  ;;  %v2927_v1 = vld [vmem:[%s4340_s6 + $0x68] sm:$0xff] }
 0xe99   :  { %1589 = vmax.xlane.f32.xlu1 %v1588_v3  ;;  %v3217_v5 = vpop.f32.mrf.mxu0  ;;  %v2925_v3 = vld [vmem:[%s4340_s6 + $0x58] sm:$0xff] }
 0xe9a   :  { %v1587_v6 = vadd.f32 %v3699_v4, %v1585_v2  ;;  %v2926_v2 = vld [vmem:[%s4340_s6 + $0x60] sm:$0xff]  ;;  %v2924_v5 = vld [vmem:[%s4340_s6 + $0x50] sm:$0xff] }
 0xe9c   :  { %v1591_v7 = vsel %vm397_vm3, %v1587_v6, -inf }
 0xe9d   :  { %1592 = vmax.xlane.f32.xlu0 %v1591_v7  ;;  %v2922_v7 = vld [vmem:[%s4340_s6 + $0x40] sm:$0xff] }
 0xeaa   :  { %1838 = vrot.lane.b32.xlu1 %v1426_v56, %s3473_s29 }
 0xeae   :  { %1758 = vrot.lane.b32.xlu1 %v1420_v52, %s3472_s4 }
 0xf22   :  { %v1590_v8 = vpop.xlane.xlu1 %1589 }
 0xf23   :  { %v1594_v61 = vsub.f32 %v1586_v0, %v1590_v8  ;;  %v2929_v0 = vld [vmem:[%s4340_s6 + $0x78] sm:$0xff] }
 0xf25   :  { %v1596_v11 = vmul.f32 1.442695, %v1594_v61 }
 0xf26   :  { %v1593_v12 = vpop.xlane.xlu0 %1592  ;;  %v1839_v17 = vpop.permute.xlu1 %1838 }
 0xf27   :  { %3389 = vpow2.f32 %v1596_v11  ;;  %v1595_v10 = vsub.f32 %v1587_v6, %v1593_v12  ;;  %v2923_v6 = vld [vmem:[%s4340_s6 + $0x48] sm:$0xff] }
 0xf29   :  { %v1598_v9 = vmul.f32 1.442695, %v1595_v10 }
 0xf2a   :  { %v1759_v18 = vpop.permute.xlu1 %1758 }
 0xf2b   :  { %3391 = vpow2.f32 %v1598_v9 }
 0xf34   :  { %v3390_v13 = vpop.eup %3389 }
 0xf35   :  { %v1600_v14 = vsel %vm397_vm3, %v3390_v13, 0.0 }
 0xf36   :  { %1601 = vadd.xlane.f32.xlu0 %v1600_v14 }
 0xf38   :  { %v3392_v15 = vpop.eup %3391 }
 0xf39   :  { %v1603_v16 = vsel %vm397_vm3, %v3392_v15, 0.0 }
 0xf3a   :  { %1604 = vadd.xlane.f32.xlu1 %v1603_v16 }
 0xf4b   :  { %1836 = vrot.lane.b32.xlu1 %v1426_v56, %s3472_s4 }
 0xf4c   :  { %1760 = vrot.lane.b32.xlu0 %v1420_v52, %s3473_s29 }
 0xfbf   :  { %v1602_v20 = vpop.xlane.xlu0 %1601 }
 0xfc0   :  { %3393 = vrcp.f32 %v1602_v20 }
 0xfc3   :  { %v1605_v21 = vpop.xlane.xlu1 %1604  ;;  %v1761_v24 = vpop.permute.xlu0 %1760 }
 0xfc4   :  { %3395 = vrcp.f32 %v1605_v21 }
 0xfc7   :  { %v1837_v27 = vpop.permute.xlu1 %1836 }
 0xfcd   :  { %v3394_v22 = vpop.eup %3393 }
 0xfce   :  { %v1608_v23 = vmul.f32 %v3394_v22, %v3390_v13 }
 0xfd0   :  { %3221 = vmatmul.mubr.msk.f32.vlgmr.msra.gmra.mxu0 %vm397_vm3, %v1608_v23 }
 0xfd1   :  { %v3396_v25 = vpop.eup %3395  ;;  %3229 = vmatpush3.xpose.msk.msra.mxu0 %vm229_vm2, %v1761_v24  ;;  %3230 = vmatprep.mubr.msk.f32.mxu0 %vm3470_vm1, %v3469_v19 }
 0xfd2   :  { %v1609_v26 = vmul.f32 %v3396_v25, %v3392_v15  ;;  %3238 = vmatprep.subr.mxu0 %v3469_v19  ;;  %v2931_v15 = vld [vmem:[%s4341_s7 + $0x1] ss:$0 sm:$0xff] }
 0xfd4   :  { %3226 = vmatmul.mubr.msk.f32.vlgmr.msra.gmra.mxu1 %vm397_vm3, %v1609_v26  ;;  %3231 = vmatmul.mubr.msk.f32.vlgmr.msra.gmra.mxu0 %vm229_vm2, %v1759_v18 }
 0xfd5   :  { %3234 = vmatpush3.xpose.msk.msra.mxu1 %vm229_vm2, %v1839_v17  ;;  %3235 = vmatprep.mubr.msk.f32.mxu1 %vm3470_vm1, %v3469_v19 }
 0xfd6   :  { %3243 = vmatprep.subr.mxu1 %v3469_v19  ;;  %3240 = vmatprep.mubr.msk.f32.mxu0 %vm3470_vm1, %v3469_v19 }
 0xfd8   :  { %3236 = vmatmul.mubr.msk.f32.vlgmr.msra.gmra.mxu1 %vm229_vm2, %v1837_v27 }
 0xfd9   :  { %3245 = vmatprep.mubr.msk.f32.mxu1 %vm3470_vm1, %v3469_v19 }
0x1090   :  { %v1679_v28 = vpop.f32.mrf.mxu0 }
0x1091   :  { %1756 = vst.msk [vmem:[#allocation2] sm:$0xff] %vm229_vm2, %v1679_v28 }
0x1092   :  { %v3222_v29 = vpop.f32.mrf.mxu0 }
0x1094   :  { %v1752_v30 = vpop.f32.mrf.mxu1  ;;  %v1832_v31 = vpop.f32.mrf.mxu0 }
0x1095   :  { %1757 = vst.msk [vmem:[#allocation2 + $0x8] sm:$0xff] %vm229_vm2, %v1752_v30  ;;  %v1914_v32 = vmul.f32 0.17677669, %v1832_v31 }
0x1096   :  { %v3227_v33 = vpop.f32.mrf.mxu1  ;;  %v3232_v34 = vpop.f32.mrf.mxu0 }
0x1097   :  { %v1916_v35 = vadd.f32 %v3693_v63, %v1914_v32  ;;  %v2944_v34 = vld [vmem:[%s4344_s10 + $0x70] sm:$0xff] }
0x1098   :  { %v1910_v36 = vpop.f32.mrf.mxu1 }
0x1099   :  { %v1915_v37 = vmul.f32 0.17677669, %v1910_v36  ;;  %v1918_v38 = vsel %vm397_vm3, %v1916_v35, -inf  ;;  %v2942_v36 = vld [vmem:[%s4344_s10 + $0x60] sm:$0xff] }
0x109a   :  { %v3237_v39 = vpop.f32.mrf.mxu1  ;;  %1919 = vmax.xlane.f32.xlu0 %v1918_v38  ;;  %v2940_v38 = vld [vmem:[%s4344_s10 + $0x50] sm:$0xff] }
0x109b   :  { %v1917_v40 = vadd.f32 %v3699_v4, %v1915_v37  ;;  %v2941_v37 = vld [vmem:[%s4344_s10 + $0x58] sm:$0xff]  ;;  %v2939_v39 = vld [vmem:[%s4344_s10 + $0x48] sm:$0xff] }
0x109d   :  { %v1921_v41 = vsel %vm397_vm3, %v1917_v40, -inf }
0x109e   :  { %1922 = vmax.xlane.f32.xlu1 %v1921_v41 }
0x10af   :  { %2018 = vrot.lane.b32.xlu1 %v3960_v59, %s3472_s4 }
0x1123   :  { %v1920_v44 = vpop.xlane.xlu0 %1919 }
0x1124   :  { %v1924_v43 = vsub.f32 %v1916_v35, %v1920_v44  ;;  %v2943_v35 = vld [vmem:[%s4344_s10 + $0x68] sm:$0xff] }
0x1126   :  { %v1926_v45 = vmul.f32 1.442695, %v1924_v43 }
0x1127   :  { %v1923_v50 = vpop.xlane.xlu1 %1922 }
0x1128   :  { %3397 = vpow2.f32 %v1926_v45  ;;  %v1925_v63 = vsub.f32 %v1917_v40, %v1923_v50  ;;  %v2938_v40 = vld [vmem:[%s4344_s10 + $0x40] sm:$0xff] }
0x112a   :  { %v1928_v51 = vmul.f32 1.442695, %v1925_v63 }
0x112b   :  { %v2019_v52 = vpop.permute.xlu1 %2018 }
0x112c   :  { %3399 = vpow2.f32 %v1928_v51  ;;  %3244 = vmatpush3.msra.mxu1 %v2019_v52  ;;  %v2936_v52 = vld [vmem:[%s4342_s8 + $0x1] ss:$0 sm:$0xff] }
0x1135   :  { %v3398_v53 = vpop.eup %3397 }
0x1136   :  { %v1930_v55 = vsel %vm397_vm3, %v3398_v53, 0.0 }
0x1137   :  { %1931 = vadd.xlane.f32.xlu0 %v1930_v55  ;;  %v2937_v55 = vld [vmem:[%s4343_s9 + $0x1] ss:$0 sm:$0xff] }
0x1139   :  { %v3400_v4 = vpop.eup %3399 }
0x113a   :  { %v1933_v56 = vsel %vm397_vm3, %v3400_v4, 0.0 }
0x113b   :  { %1934 = vadd.xlane.f32.xlu0 %v1933_v56 }
0x1151   :  { %1941 = vrot.lane.b32.xlu0 %v3957_v54, %s3472_s4  ;;  %v2928_v54 = vld [vmem:[%s4340_s6 + $0x70] sm:$0xff]  ;;  %s3451_s6 = scalar_lea.vmem %s2853_s30, 32 }
0x1152   :  { %p3453_p2 = scmp.lt.s32.totalorder %s3451_s6, %s3447_s5 }
0x1154   :  { %p3454_p3 = por %p3453_p2, %p3452_p1 }
0x1156   :  { %p3455_p4 = pnand %p3454_p3, %p3448_p0 }
0x11c0   :  { %v1932_v58 = vpop.xlane.xlu0 %1931 }
0x11c1   :  { %3401 = vrcp.f32 %v1932_v58 }
0x11c4   :  { %v1935_v59 = vpop.xlane.xlu0 %1934 }
0x11c5   :  { %3403 = vrcp.f32 %v1935_v59 }
0x11c8   :  { %v1942_v48 = vpop.permute.xlu0 %1941 }
0x11c9   :  { %3239 = vmatpush3.msra.mxu0 %v1942_v48 }
0x11ca   :  { %3248 = vmatprep.subr.mxu0 %v2929_v0 }
0x11ce   :  { %v3402_v49 = vpop.eup %3401 }
0x11cf   :  { %v1938_v57 = vmul.f32 %v3402_v49, %v3398_v53 }
0x11d1   :  { %3241 = vmatmul.mubr.msk.f32.vlgmr.msra.gmra.mxu0 %vm397_vm3, %v1938_v57  ;;  %v2965_v57 = vld [vmem:[%s4346_s12 + $0xf8] sm:$0xff] }
0x11d2   :  { %v3404_v60 = vpop.eup %3403  ;;  %3249 = vmatpush3.msra.mxu0 %v2929_v0  ;;  %v2962_v0 = vld [vmem:[%s4346_s12 + $0xe0] sm:$0xff] }
0x11d3   :  { %v1939_v62 = vmul.f32 %v3404_v60, %v3400_v4  ;;  %3250 = vmatprep.subr.mxu0 %v2928_v54  ;;  %v2964_v60 = vld [vmem:[%s4346_s12 + $0xf0] sm:$0xff] }
0x11d4   :  { %3251 = vmatpush3.msra.mxu0 %v2928_v54  ;;  %v2961_v54 = vld [vmem:[%s4346_s12 + $0xd8] sm:$0xff] }
0x11d5   :  { %3246 = vmatmul.mubr.msk.f32.vlgmr.msra.gmra.mxu1 %vm397_vm3, %v1939_v62  ;;  %3252 = vmatprep.subr.mxu0 %v2927_v1  ;;  %v2963_v62 = vld [vmem:[%s4346_s12 + $0xe8] sm:$0xff] }
0x11d6   :  { %3253 = vmatpush3.msra.mxu0 %v2927_v1  ;;  %v2960_v1 = vld [vmem:[%s4346_s12 + $0xd0] sm:$0xff] }
0x11d7   :  { %3254 = vmatprep.subr.mxu0 %v2926_v2 }
0x11d8   :  { %3255 = vmatpush3.msra.mxu0 %v2926_v2  ;;  %v2959_v2 = vld [vmem:[%s4346_s12 + $0xc8] sm:$0xff] }
0x11d9   :  { %3256 = vmatprep.subr.mxu0 %v2925_v3 }
0x11da   :  { %3257 = vmatpush3.msra.mxu0 %v2925_v3  ;;  %v2958_v3 = vld [vmem:[%s4346_s12 + $0xc0] sm:$0xff] }
0x11db   :  { %3258 = vmatprep.subr.mxu0 %v2924_v5 }
0x11dc   :  { %3259 = vmatpush3.msra.mxu0 %v2924_v5  ;;  %v2957_v5 = vld [vmem:[%s4346_s12 + $0xb8] sm:$0xff] }
0x11dd   :  { %3260 = vmatprep.subr.mxu0 %v2923_v6 }
0x11de   :  { %3261 = vmatpush3.msra.mxu0 %v2923_v6  ;;  %v2956_v6 = vld [vmem:[%s4346_s12 + $0xb0] sm:$0xff] }
0x11df   :  { %3262 = vmatprep.subr.mxu0 %v2922_v7 }
0x11e0   :  { %3263 = vmatpush3.msra.mxu0 %v2922_v7  ;;  %v2955_v7 = vld [vmem:[%s4346_s12 + $0xa8] sm:$0xff] }
0x11e1   :  { %3286 = vmatprep.subr.mxu0 %v2965_v57 }
0x1291   :  { %v2013_v8 = vpop.f32.mrf.mxu0 }
0x1292   :  { %2096 = vrot.lane.b32.xlu1 %v2013_v8, %s3473_s29  ;;  %v2954_v8 = vld [vmem:[%s4346_s12 + $0xa0] sm:$0xff] }
0x1293   :  { %v3242_v61 = vpop.f32.mrf.mxu0 }
0x1294   :  { %v2953_v61 = vld [vmem:[%s4346_s12 + $0x98] sm:$0xff] }
0x1295   :  { %v2090_v11 = vpop.f32.mrf.mxu1 }
0x1296   :  { %2098 = vrot.lane.b32.xlu1 %v2090_v11, %s3473_s29  ;;  %v2952_v11 = vld [vmem:[%s4346_s12 + $0x90] sm:$0xff] }
0x1297   :  { %v3247_v12 = vpop.f32.mrf.mxu1 }
0x1298   :  { %v2951_v12 = vld [vmem:[%s4346_s12 + $0x88] sm:$0xff] }
0x1304   :  { %v2097_v10 = vpop.permute.xlu1 %2096 }
0x1305   :  { %2102 = vst.msk [vmem:[#allocation2] sm:$0xff] %vm912_vm4, %v2097_v10  ;;  %v2950_v10 = vld [vmem:[%s4346_s12 + $0x80] sm:$0xff] }
0x1308   :  { %v2099_v9 = vpop.permute.xlu1 %2098 }
0x1309   :  { %2103 = vst.msk [vmem:[#allocation2 + $0x8] sm:$0xff] %vm912_vm4, %v2099_v9  ;;  %v2947_v9 = vld [vmem:[%s4345_s11 + $0x1] ss:$0 sm:$0xff]  ;;  %vm2738_vm4 = vcmask 15368  }
0x130c   :  { %v2104_v13 = vld [vmem:[#allocation2] sm:$0xff] }
0x130d   :  { %3264 = vmatprep.mubr.msk.f32.mxu0 %vm69_vm0, %v2104_v13 }
0x1310   :  { %v2105_v14 = vld [vmem:[#allocation2 + $0x8] sm:$0xff] }
0x1311   :  { %3265 = vmatmul.mubr.msk.f32.vlgmr.msra.gmra.mxu0 %vm69_vm0, %v2105_v14 }
0x1312   :  { %3287 = vmatpush3.msra.mxu0 %v2965_v57  ;;  %v2519_v57 = vld [vmem:[%s4350_s16 + $0x18] sm:$0xff] }
0x1313   :  { %3288 = vmatprep.subr.mxu0 %v2964_v60 }
0x1314   :  { %3289 = vmatpush3.msra.mxu0 %v2964_v60  ;;  %v2518_v60 = vld [vmem:[%s4350_s16 + $0x10] sm:$0xff] }
0x1315   :  { %3290 = vmatprep.subr.mxu0 %v2963_v62 }
0x1316   :  { %3291 = vmatpush3.msra.mxu0 %v2963_v62  ;;  %v2517_v62 = vld [vmem:[%s4350_s16 + $0x8] sm:$0xff] }
0x1317   :  { %3292 = vmatprep.subr.mxu0 %v2962_v0 }
0x1318   :  { %3293 = vmatpush3.msra.mxu0 %v2962_v0  ;;  %v2516_v0 = vld [vmem:[%s4350_s16] sm:$0xff] }
0x1319   :  { %3294 = vmatprep.subr.mxu0 %v2961_v54 }
0x131a   :  { %3295 = vmatpush3.msra.mxu0 %v2961_v54 }
0x131b   :  { %3296 = vmatprep.subr.mxu0 %v2960_v1 }
0x131c   :  { %3297 = vmatpush3.msra.mxu0 %v2960_v1 }
0x131d   :  { %3298 = vmatprep.subr.mxu0 %v2959_v2 }
0x131e   :  { %3299 = vmatpush3.msra.mxu0 %v2959_v2 }
0x131f   :  { %3300 = vmatprep.subr.mxu0 %v2958_v3 }
0x1320   :  { %3301 = vmatpush3.msra.mxu0 %v2958_v3 }
0x1321   :  { %3302 = vmatprep.subr.mxu0 %v2957_v5 }
0x1322   :  { %3303 = vmatpush3.msra.mxu0 %v2957_v5 }
0x1323   :  { %3304 = vmatprep.subr.mxu0 %v2956_v6 }
0x1324   :  { %3305 = vmatpush3.msra.mxu0 %v2956_v6 }
0x1325   :  { %3306 = vmatprep.subr.mxu0 %v2955_v7 }
0x1326   :  { %3307 = vmatpush3.msra.mxu0 %v2955_v7 }
0x1327   :  { %3308 = vmatprep.subr.mxu0 %v2954_v8 }
0x1328   :  { %3309 = vmatpush3.msra.mxu0 %v2954_v8  ;;  %v2970_v8 = vld [vmem:[%s4348_s14 + $0x1] ss:$0 sm:$0xff] }
0x1329   :  { %3310 = vmatprep.subr.mxu0 %v2953_v61 }
0x132a   :  { %3311 = vmatpush3.msra.mxu0 %v2953_v61 }
0x132b   :  { %3312 = vmatprep.subr.mxu0 %v2952_v11 }
0x132c   :  { %3313 = vmatpush3.msra.mxu0 %v2952_v11 }
0x132d   :  { %3314 = vmatprep.subr.mxu0 %v2951_v12 }
0x132e   :  { %3315 = vmatpush3.msra.mxu0 %v2951_v12 }
0x132f   :  { %3316 = vmatprep.subr.mxu0 %v2950_v10 }
0x1330   :  { %3317 = vmatpush3.msra.mxu0 %v2950_v10 }
0x13d1   :  { %v3266_v16 = vpop.f32.mrf.mxu0 }
0x13d2   :  { %v2201_v17 = vadd.f32 %v3266_v16, %v2931_v15 }
0x13d3   :  { %v2195_v18 = vpop.f32.mrf.mxu0 }
0x13d4   :  { %v2196_v20 = vadd.f32 %v2931_v15, %v2195_v18  ;;  %v2205_v21 = vadd.f32 %v2201_v17, %v3944_v46 }
0x13d6   :  { %v2213_v22 = vsel %vm69_vm0, %v2205_v21, 0.0  ;;  %v2204_v23 = vadd.f32 %v2196_v20, %v3939_v42  ;;  %v2945_v42 = vld [vmem:[%s4344_s10 + $0x78] sm:$0xff] }
0x13d7   :  { %2214 = vadd.xlane.f32.xlu1 %v2213_v22  ;;  %3267 = vmatprep.subr.mxu1 %v2945_v42 }
0x13d8   :  { %v2210_v24 = vsel %vm69_vm0, %v2204_v23, 0.0  ;;  %3268 = vmatpush3.msra.mxu1 %v2945_v42 }
0x13d9   :  { %2211 = vadd.xlane.f32.xlu0 %v2210_v24  ;;  %3269 = vmatprep.subr.mxu1 %v2944_v34 }
0x13da   :  { %3270 = vmatpush3.msra.mxu1 %v2944_v34  ;;  %v2967_v34 = vld [vmem:[%s4347_s13 + $0x1] ss:$0 sm:$0xff] }
0x13db   :  { %3271 = vmatprep.subr.mxu1 %v2943_v35 }
0x13dc   :  { %3272 = vmatpush3.msra.mxu1 %v2943_v35 }
0x13dd   :  { %3273 = vmatprep.subr.mxu1 %v2942_v36 }
0x13de   :  { %3274 = vmatpush3.msra.mxu1 %v2942_v36 }
0x13df   :  { %3275 = vmatprep.subr.mxu1 %v2941_v37 }
0x13e0   :  { %3276 = vmatpush3.msra.mxu1 %v2941_v37 }
0x13e1   :  { %3277 = vmatprep.subr.mxu1 %v2940_v38 }
0x13e2   :  { %3278 = vmatpush3.msra.mxu1 %v2940_v38 }
0x13e3   :  { %3279 = vmatprep.subr.mxu1 %v2939_v39 }
0x13e4   :  { %3280 = vmatpush3.msra.mxu1 %v2939_v39 }
0x13e5   :  { %3281 = vmatprep.subr.mxu1 %v2938_v40 }
0x13e6   :  { %3282 = vmatpush3.msra.mxu1 %v2938_v40 }
0x1460   :  { %v2215_v25 = vpop.xlane.xlu1 %2214 }
0x1461   :  { %v2217_v26 = vmul.f32 0.015625, %v2215_v25 }
0x1462   :  { %v2212_v27 = vpop.xlane.xlu0 %2211 }
0x1463   :  { %v2216_v28 = vmul.f32 0.015625, %v2212_v27  ;;  %v2219_v29 = vsub.f32 %v2205_v21, %v2217_v26 }
0x1465   :  { %v2218_v30 = vsub.f32 %v2204_v23, %v2216_v28  ;;  %v2221_v33 = vmul.f32 %v2219_v29, %v2219_v29 }
0x1467   :  { %v2220_v31 = vmul.f32 %v2218_v30, %v2218_v30  ;;  %v2225_v46 = vsel %vm69_vm0, %v2221_v33, 0.0 }
0x1469   :  { %v2222_v32 = vsel %vm69_vm0, %v2220_v31, 0.0 }
0x146a   :  { %2223 = vadd.xlane.f32.xlu0 %v2222_v32 }
0x146e   :  { %2226 = vadd.xlane.f32.xlu0 %v2225_v46 }
0x14f3   :  { %v2224_v41 = vpop.xlane.xlu0 %2223 }
0x14f4   :  { %v2228_v44 = vmul.f32 0.015625, %v2224_v41 }
0x14f6   :  { %v2230_v43 = vadd.f32 1e-12, %v2228_v44 }
0x14f7   :  { %v2227_v45 = vpop.xlane.xlu0 %2226 }
0x14f8   :  { %3405 = vrsqrt.f32 %v2230_v43  ;;  %v2229_v50 = vmul.f32 0.015625, %v2227_v45 }
0x14fa   :  { %v2231_v63 = vadd.f32 1e-12, %v2229_v50 }
0x14fc   :  { %3407 = vrsqrt.f32 %v2231_v63 }
0x1505   :  { %v3406_v51 = vpop.eup %3405 }
0x1506   :  { %v2234_v53 = vmul.f32 %v3406_v51, %v2218_v30 }
0x1508   :  { %v2242_v4 = vmul.f32 %v2936_v52, %v2234_v53 }
0x1509   :  { %v3408_v56 = vpop.eup %3407 }
0x150a   :  { %v2235_v58 = vmul.f32 %v3408_v56, %v2219_v29  ;;  %v4086_v59 = vadd.f32 %v2937_v55, %v2242_v4 }
0x150c   :  { %v2243_v48 = vmul.f32 %v2936_v52, %v2235_v58  ;;  %3283 = vmatprep.mubr.msk.f32.mxu1 %vm69_vm0, %v4086_v59  ;;  %v2523_v58 = vld [vmem:[%s4350_s16 + $0x38] sm:$0xff] }
0x150d   :  { %3321 = vmatprep.subr.mxu1 %v2523_v58 }
0x150e   :  { %v4090_v49 = vadd.f32 %v2937_v55, %v2243_v48  ;;  %v2521_v48 = vld [vmem:[%s4350_s16 + $0x28] sm:$0xff] }
0x1510   :  { %3284 = vmatmul.mubr.msk.f32.vlgmr.msra.gmra.mxu1 %vm69_vm0, %v4090_v49 }
0x1511   :  { %3322 = vmatpush3.msra.mxu1 %v2523_v58 }
0x15d0   :  { %v3285_v13 = vpop.f32.mrf.mxu1 }
0x15d1   :  { %v2347_v14 = vadd.f32 %v3285_v13, %v2947_v9 }
0x15d2   :  { %v2341_v15 = vpop.f32.mrf.mxu1 }
0x15d3   :  { %v2351_v16 = vmul.f32 %v2347_v14, %v2347_v14  ;;  %v2342_v17 = vadd.f32 %v2947_v9, %v2341_v15  ;;  %v2971_v9 = vld [vmem:[%s4349_s15 + $0x1] ss:$0 sm:$0xff] }
0x15d5   :  { %v2353_v18 = vmul.f32 %v2351_v16, %v2347_v14  ;;  %v2350_v20 = vmul.f32 %v2342_v17, %v2342_v17  ;;  %v3474_v16 = vmov 1  }
0x15d6   :  { %3352 = vset.pattern.permute.xlu1 %v3474_v16  ;;  %3351 = vset.pattern.permute.xlu0 %v3474_v16 }
0x15d7   :  { %v2355_v21 = vmul.f32 0.044715, %v2353_v18  ;;  %v2352_v22 = vmul.f32 %v2350_v20, %v2342_v17  ;;  %v2972_v18 = vld [vmem:[%s4351_s17] ss:$0 sm:$0xff] }
0x15d9   :  { %v2357_v23 = vadd.f32 %v2355_v21, %v2347_v14  ;;  %v2354_v24 = vmul.f32 0.044715, %v2352_v22 }
0x15db   :  { %v2359_v25 = vmul.f32 0.7978846, %v2357_v23  ;;  %v2356_v26 = vadd.f32 %v2354_v24, %v2342_v17 }
0x15dd   :  { %3409 = vtanh.f32 %v2359_v25  ;;  %v2358_v27 = vmul.f32 0.7978846, %v2356_v26 }
0x15df   :  { %3411 = vtanh.f32 %v2358_v27 }
0x15ea   :  { %v3410_v28 = vpop.eup %3409 }
0x15eb   :  { %v2363_v29 = vadd.f32 1.0, %v3410_v28 }
0x15ec   :  { %v3412_v30 = vpop.eup %3411 }
0x15ed   :  { %v2362_v31 = vadd.f32 1.0, %v3412_v30  ;;  %v2365_v32 = vmul.f32 0.5, %v2363_v29  ;;  %v4231_v29 = vld [vmem:[%s4352_s18 + $0x8] sm:$0xff] }
0x15ee   :  { %v2719_v30 = vadd.s32 5, %v4231_v29  ;;  %vm2660_vm3 = vcmp.ne.s32.totalorder %v4231_v29, 4294967196 }
0x15ef   :  { %v2364_v33 = vmul.f32 0.5, %v2362_v31  ;;  %v2367_v42 = vmul.f32 %v2365_v32, %v2347_v14  ;;  %v4237_v31 = vld [vmem:[%s4352_s18] sm:$0xff]  ;;  %s3477_s18 = smov 127  }
0x15f0   :  { %v2787_v32 = vadd.s32 10, %v4237_v31  ;;  %vm2659_vm2 = vcmp.ne.s32.totalorder %v4237_v31, 4294967196 }
0x15f1   :  { %v2366_v46 = vmul.f32 %v2364_v33, %v2342_v17  ;;  %v4187_v17 = vand.u32 127, %v133_v47  ;;  %v2718_v33 = vadd.s32 5, %v4237_v31  ;;  %v4296_v25 = vsel %vm2659_vm2, 1.0, %v3469_v19 }
0x15f3   :  { %3318 = vmatprep.mubr.f32.mxu0 %v2366_v46  ;;  %vm2691_vm5 = vcmp.ge.s32.totalorder %v4187_v17, 5  ;;  %vm2692_vm6 = vcmp.lt.s32.totalorder %v4187_v17, 10  ;;  %vm2760_vm8 = vcmp.ge.s32.totalorder %v4187_v17, 10  ;;  %vm2761_vm9 = vcmp.lt.s32.totalorder %v4187_v17, 13 }
0x15f4   :  { %3319 = vmatmul.mubr.f32.vlgmr.msra.gmra.mxu0 %v2367_v42  ;;  %vm4194_vm7 = vmand %vm2691_vm5, %vm2692_vm6  ;;  %v3475_v46 = vmov 2   ;;  %v2788_v42 = vadd.s32 10, %v4231_v29  ;;  %vm2619_vm11 = vcmp.lt.s32.totalorder %v4187_v17, 5  ;;  %vm2807_vm5 = vcmask 23568  }
0x15f5   :  { %vm4211_vm10 = vmand %vm2760_vm8, %vm2761_vm9  ;;  %vm2669_vm6 = vcmask 7168  }
0x16b4   :  { %v3320_v35 = vpop.f32.mrf.mxu0 }
0x16b5   :  { %v2465_v36 = vadd.f32 %v3320_v35, %v2967_v34 }
0x16b6   :  { %v2459_v37 = vpop.f32.mrf.mxu0 }
0x16b7   :  { %v2460_v38 = vadd.f32 %v2967_v34, %v2459_v37  ;;  %v2469_v39 = vadd.f32 %v2465_v36, %v4090_v49  ;;  %v2520_v49 = vld [vmem:[%s4350_s16 + $0x20] sm:$0xff]  ;;  %v3476_v34 = vmov 0  }
0x16b9   :  { %v2477_v40 = vsel %vm69_vm0, %v2469_v39, 0.0  ;;  %v2468_v41 = vadd.f32 %v2460_v38, %v4086_v59  ;;  %v2522_v59 = vld [vmem:[%s4350_s16 + $0x30] sm:$0xff] }
0x16ba   :  { %2478 = vadd.xlane.f32.xlu1 %v2477_v40  ;;  %3323 = vmatprep.subr.mxu1 %v2522_v59 }
0x16bb   :  { %v2474_v44 = vsel %vm69_vm0, %v2468_v41, 0.0  ;;  %3324 = vmatpush3.msra.mxu1 %v2522_v59 }
0x16bc   :  { %2475 = vadd.xlane.f32.xlu0 %v2474_v44  ;;  %3325 = vmatprep.subr.mxu1 %v2521_v48 }
0x16bd   :  { %3326 = vmatpush3.msra.mxu1 %v2521_v48 }
0x16be   :  { %3327 = vmatprep.subr.mxu1 %v2520_v49 }
0x16bf   :  { %3328 = vmatpush3.msra.mxu1 %v2520_v49 }
0x16c0   :  { %3329 = vmatprep.subr.mxu1 %v2519_v57 }
0x16c1   :  { %3330 = vmatpush3.msra.mxu1 %v2519_v57 }
0x16c2   :  { %3331 = vmatprep.subr.mxu1 %v2518_v60 }
0x16c3   :  { %3332 = vmatpush3.msra.mxu1 %v2518_v60 }
0x16c4   :  { %3333 = vmatprep.subr.mxu1 %v2517_v62 }
0x16c5   :  { %3334 = vmatpush3.msra.mxu1 %v2517_v62 }
0x16c6   :  { %3335 = vmatprep.subr.mxu1 %v2516_v0 }
0x16c7   :  { %3336 = vmatpush3.msra.mxu1 %v2516_v0 }
0x1743   :  { %v2479_v43 = vpop.xlane.xlu1 %2478 }
0x1744   :  { %v2481_v45 = vmul.f32 0.015625, %v2479_v43 }
0x1745   :  { %v2476_v50 = vpop.xlane.xlu0 %2475 }
0x1746   :  { %v2483_v63 = vsub.f32 %v2469_v39, %v2481_v45  ;;  %v2480_v51 = vmul.f32 0.015625, %v2476_v50 }
0x1748   :  { %v2482_v52 = vsub.f32 %v2468_v41, %v2480_v51  ;;  %v2485_v53 = vmul.f32 %v2483_v63, %v2483_v63 }
0x174a   :  { %v2489_v55 = vsel %vm69_vm0, %v2485_v53, 0.0  ;;  %v2484_v4 = vmul.f32 %v2482_v52, %v2482_v52 }
0x174b   :  { %2490 = vadd.xlane.f32.xlu1 %v2489_v55 }
0x174c   :  { %v2486_v56 = vsel %vm69_vm0, %v2484_v4, 0.0 }
0x174d   :  { %2487 = vadd.xlane.f32.xlu0 %v2486_v56 }
0x17d4   :  { %v2491_v54 = vpop.xlane.xlu1 %2490 }
0x17d5   :  { %v2493_v1 = vmul.f32 0.015625, %v2491_v54 }
0x17d6   :  { %v2488_v2 = vpop.xlane.xlu0 %2487 }
0x17d7   :  { %v2495_v3 = vadd.f32 1e-12, %v2493_v1  ;;  %v2492_v5 = vmul.f32 0.015625, %v2488_v2 }
0x17d9   :  { %3413 = vrsqrt.f32 %v2495_v3  ;;  %v2494_v6 = vadd.f32 1e-12, %v2492_v5 }
0x17db   :  { %3415 = vrsqrt.f32 %v2494_v6 }
0x17e6   :  { %v3414_v7 = vpop.eup %3413 }
0x17e7   :  { %v2499_v61 = vmul.f32 %v3414_v7, %v2483_v63 }
0x17e8   :  { %v3416_v11 = vpop.eup %3415 }
0x17e9   :  { %v2498_v12 = vmul.f32 %v3416_v11, %v2482_v52  ;;  %v2507_v10 = vmul.f32 %v2970_v8, %v2499_v61 }
0x17eb   :  { %v2506_v13 = vmul.f32 %v2970_v8, %v2498_v12  ;;  %v2515_v15 = vadd.f32 %v2971_v9, %v2507_v10 }
0x17ed   :  { %v2514_v14 = vadd.f32 %v2971_v9, %v2506_v13 }
0x17ef   :  { %3337 = vmatprep.mubr.msk.f32.mxu1 %vm69_vm0, %v2514_v14 }
0x17f0   :  { %3338 = vmatmul.mubr.msk.f32.vlgmr.msra.gmra.mxu1 %vm69_vm0, %v2515_v15 }
0x18b0   :  { %v3339_v20 = vpop.f32.mrf.mxu1 }
0x18b1   :  { %v4198_v22 = vadd.f32 %v3339_v20, %v2972_v18 }
0x18b2   :  { %v2603_v47 = vpop.f32.mrf.mxu1 }
0x18b3   :  { %2613 = vst [vmem:[%s4353_s19 + $0x8] sm:$0xff] %v4198_v22  ;;  %v4206_v23 = vadd.f32 %v2972_v18, %v2603_v47  ;;  %v2695_v24 = vsel %vm4194_vm7, %v4198_v22, -1e+30  ;;  %v2764_v27 = vsel %vm4211_vm10, %v4198_v22, -1e+30 }
0x18b4   :  { %2698 = vmax.xlane.f32.xlu1 %v2695_v24  ;;  %v2622_v35 = vsel %vm2619_vm11, %v4198_v22, -1e+30 }
0x18b5   :  { %2612 = vst [vmem:[%s4353_s19] sm:$0xff] %v4206_v23  ;;  %v2694_v26 = vsel %vm4194_vm7, %v4206_v23, -1e+30  ;;  %v2763_v28 = vsel %vm4211_vm10, %v4206_v23, -1e+30  ;;  %v2621_v36 = vsel %vm2619_vm11, %v4206_v23, -1e+30 }
0x18b6   :  { %2696 = vmax.xlane.f32.xlu0 %v2694_v26 }
0x18b8   :  { %2767 = vmax.xlane.f32.xlu1 %v2764_v27 }
0x18ba   :  { %2765 = vmax.xlane.f32.xlu0 %v2763_v28 }
0x18c9   :  { %2724 = vperm.xlu1 %3352, %v2719_v30  }
0x18cd   :  { %3353 = vset.pattern.permute.xlu1 %v3475_v46 }
0x18ce   :  { %2790 = vperm.xlu1 %3353, %v2787_v32  }
0x18d0   :  { %2721 = vperm.xlu0 %3351, %v2718_v33  }
0x18d2   :  { %2793 = vperm.xlu1 %3353, %v2788_v42  }
0x18d4   :  { %3354 = vset.pattern.permute.xlu0 %v3476_v34 }
0x18d6   :  { %3355 = vset.pattern.permute.xlu1 %v3476_v34 }
0x18ef   :  { %2625 = vmax.xlane.f32.xlu0 %v2622_v35 }
0x18f6   :  { %2623 = vmax.xlane.f32.xlu1 %v2621_v36 }
0x1905   :  { %2646 = vperm.xlu0 %3354, %v4237_v31  }
0x1909   :  { %3356 = vset.pattern.permute.xlu0 %v3475_v46 }
0x193d   :  { %v4250_v37 = vpop.xlane.xlu1 %2698 }
0x193e   :  { %v2701_v38 = vsub.f32 %v2695_v24, %v4250_v37 }
0x193f   :  { %v4253_v39 = vpop.xlane.xlu0 %2696 }
0x1940   :  { %v2704_v40 = vmul.f32 1.442695, %v2701_v38  ;;  %v2700_v41 = vsub.f32 %v2694_v26, %v4253_v39  ;;  %v2748_v26 = vsel %vm2738_vm4, %v4296_v25, 0.0 }
0x1941   :  { %v4256_v44 = vpop.xlane.xlu1 %2767 }
0x1942   :  { %3417 = vpow2.f32 %v2704_v40  ;;  %v2770_v43 = vsub.f32 %v2764_v27, %v4256_v44  ;;  %v2702_v50 = vmul.f32 1.442695, %v2700_v41 }
0x1943   :  { %v4259_v45 = vpop.xlane.xlu0 %2765 }
0x1944   :  { %v2773_v63 = vmul.f32 1.442695, %v2770_v43  ;;  %v2769_v51 = vsub.f32 %v2763_v28, %v4259_v45  ;;  %v2817_v28 = vsel %vm2807_vm5, %v4296_v25, 0.0 }
0x1945   :  { %v2725_v52 = vpop.permute.xlu1 %2724 }
0x1946   :  { %3419 = vpow2.f32 %v2773_v63  ;;  %vm2727_vm12 = vcmp.eq.s32.totalorder %v4187_v17, %v2725_v52  ;;  %v2771_v55 = vmul.f32 1.442695, %v2769_v51 }
0x1947   :  { %v2729_v53 = vsel %vm2727_vm12, %v4198_v22, 0.0  ;;  %3421 = vpow2.f32 %v2702_v50 }
0x1948   :  { %2732 = vadd.xlane.f32.xlu0 %v2729_v53  ;;  %3423 = vpow2.f32 %v2771_v55 }
0x1949   :  { %v2791_v62 = vpop.permute.xlu1 %2790 }
0x194a   :  { %vm2795_vm14 = vcmp.eq.s32.totalorder %v4187_v17, %v2791_v62 }
0x194b   :  { %v2722_v54 = vpop.permute.xlu0 %2721  ;;  %v2797_v61 = vsel %vm2795_vm14, %v4206_v23, 0.0 }
0x194c   :  { %vm2726_vm13 = vcmp.eq.s32.totalorder %v4187_v17, %v2722_v54 }
0x194d   :  { %v2794_v0 = vpop.permute.xlu1 %2793  ;;  %v2728_v8 = vsel %vm2726_vm13, %v4206_v23, 0.0 }
0x194e   :  { %vm2796_vm15 = vcmp.eq.s32.totalorder %v4187_v17, %v2794_v0 }
0x194f   :  { %v3418_v4 = vpop.eup %3417  ;;  %v2798_v11 = vsel %vm2796_vm15, %v4198_v22, 0.0 }
0x1950   :  { %v2707_v56 = vsel %vm4194_vm7, %v3418_v4, 0.0 }
0x1951   :  { %2710 = vadd.xlane.f32.xlu1 %v2707_v56 }
0x1953   :  { %v3420_v58 = vpop.eup %3419 }
0x1954   :  { %v2776_v59 = vsel %vm4211_vm10, %v3420_v58, 0.0  ;;  %v3422_v48 = vpop.eup %3421 }
0x1955   :  { %2779 = vadd.xlane.f32.xlu1 %v2776_v59  ;;  %v2706_v49 = vsel %vm4194_vm7, %v3422_v48, 0.0  ;;  %v3424_v57 = vpop.eup %3423  ;;  %vm2842_vm7 = vcmask 0  }
0x1956   :  { %v2775_v60 = vsel %vm4211_vm10, %v3424_v57, 0.0 }
0x1959   :  { %2708 = vadd.xlane.f32.xlu1 %v2706_v49 }
0x195d   :  { %2777 = vadd.xlane.f32.xlu1 %v2775_v60 }
0x196e   :  { %2649 = vperm.xlu1 %3355, %v4231_v29  }
0x1978   :  { %v4276_v3 = vpop.xlane.xlu0 %2625 }
0x1979   :  { %v2628_v5 = vsub.f32 %v2622_v35, %v4276_v3 }
0x197b   :  { %v2631_v7 = vmul.f32 1.442695, %v2628_v5 }
0x197f   :  { %v4273_v1 = vpop.xlane.xlu1 %2623 }
0x1980   :  { %v2627_v2 = vsub.f32 %v2621_v36, %v4273_v1  ;;  %v2647_v13 = vpop.permute.xlu0 %2646 }
0x1981   :  { %vm2651_vm0 = vcmp.eq.s32.totalorder %v4187_v17, %v2647_v13 }
0x1982   :  { %v2629_v6 = vmul.f32 1.442695, %v2627_v2  ;;  %v2653_v15 = vsel %vm2651_vm0, %v4206_v23, 0.0  ;;  %v4299_v23 = vsel %vm2660_vm3, 1.0, %v3469_v19 }
0x1983   :  { %v2818_v29 = vsel %vm2807_vm5, %v4299_v23, 0.0 }
0x1984   :  { %3425 = vpow2.f32 %v2629_v6  ;;  %v2819_v30 = vadd.f32 %v2818_v29, %v2817_v28 }
0x1985   :  { %3427 = vpow2.f32 %v2631_v7 }
0x1986   :  { %v2820_v32 = vrot.slane %v2819_v30, 4 }
0x1988   :  { %v2821_v42 = vadd.f32 %v2820_v32, %v2819_v30 }
0x198a   :  { %v2822_v38 = vrot.slane %v2821_v42, 2 }
0x198c   :  { %v2823_v63 = vadd.f32 %v2822_v38, %v2821_v42 }
0x198e   :  { %v2824_v58 = vrot.slane %v2823_v63, 1 }
0x1990   :  { %v2825_v0 = vadd.f32 %v2824_v58, %v2823_v63 }
0x1991   :  { %v3426_v12 = vpop.eup %3425 }
0x1992   :  { %2730 = vadd.xlane.f32.xlu1 %v2728_v8  ;;  %v2633_v10 = vsel %vm2619_vm11, %v3426_v12, 0.0  ;;  %v3428_v9 = vpop.eup %3427 }
0x1993   :  { %v2634_v14 = vsel %vm2619_vm11, %v3428_v9, 0.0 }
0x1996   :  { %2799 = vadd.xlane.f32.xlu1 %v2797_v61  ;;  %v2826_v61 = vmax.f32 %v2825_v0, 1.0 }
0x199a   :  { %2801 = vadd.xlane.f32.xlu1 %v2798_v11 }
0x199e   :  { %2635 = vadd.xlane.f32.xlu1 %v2633_v10 }
0x19a2   :  { %2637 = vadd.xlane.f32.xlu1 %v2634_v14 }
0x19a6   :  { %2655 = vadd.xlane.f32.xlu1 %v2653_v15 }
0x19d1   :  { %v2733_v50 = vpop.xlane.xlu0 %2732 }
0x19da   :  { %v2711_v16 = vpop.xlane.xlu1 %2710 }
0x19db   :  { %3429 = vlog2.f32 %v2711_v16 }
0x19de   :  { %v2780_v18 = vpop.xlane.xlu1 %2779 }
0x19e2   :  { %v2709_v20 = vpop.xlane.xlu1 %2708 }
0x19e3   :  { %3431 = vlog2.f32 %v2709_v20 }
0x19e6   :  { %v2778_v21 = vpop.xlane.xlu1 %2777 }
0x19e7   :  { %3433 = vlog2.f32 %v2778_v21 }
0x19e8   :  { %v3430_v33 = vpop.eup %3429  ;;  %3435 = vlog2.f32 %v2780_v18 }
0x19e9   :  { %v2715_v34 = vmul.f32 0.6931472, %v3430_v33  ;;  %v2679_v33 = vsel %vm2669_vm6, %v4296_v25, 0.0 }
0x19ea   :  { %v2650_v47 = vpop.permute.xlu1 %2649 }
0x19eb   :  { %vm2652_vm1 = vcmp.eq.s32.totalorder %v4187_v17, %v2650_v47  ;;  %v2749_v17 = vsel %vm2738_vm4, %v4299_v23, 0.0  ;;  %v2717_v40 = vadd.f32 %v2715_v34, %v4250_v37 }
0x19ec   :  { %v2654_v24 = vsel %vm2652_vm1, %v4198_v22, 0.0  ;;  %v2750_v27 = vadd.f32 %v2749_v17, %v2748_v26 }
0x19ed   :  { %2657 = vadd.xlane.f32.xlu0 %v2654_v24  ;;  %v2735_v52 = vsub.f32 %v2717_v40, %v2733_v50 }
0x19ee   :  { %v2751_v22 = vrot.slane %v2750_v27, 4 }
0x19ef   :  { %v2737_v48 = vmul.f32 %v4299_v23, %v2735_v52 }
0x19f0   :  { %v2752_v19 = vadd.f32 %v2751_v22, %v2750_v27  ;;  %v3432_v35 = vpop.eup %3431 }
0x19f1   :  { %v2713_v41 = vmul.f32 0.6931472, %v3432_v35  ;;  %v2740_v54 = vsel %vm2738_vm4, %v2737_v48, 0.0 }
0x19f2   :  { %v2753_v31 = vrot.slane %v2752_v19, 2 }
0x19f3   :  { %v2716_v55 = vadd.f32 %v2713_v41, %v4253_v39 }
0x19f4   :  { %v2754_v46 = vadd.f32 %v2753_v31, %v2752_v19  ;;  %v3434_v43 = vpop.eup %3433 }
0x19f5   :  { %v2782_v53 = vmul.f32 0.6931472, %v3434_v43  ;;  %v3436_v4 = vpop.eup %3435 }
0x19f6   :  { %v2755_v36 = vrot.slane %v2754_v46, 1  ;;  %v2784_v57 = vmul.f32 0.6931472, %v3436_v4 }
0x19f7   :  { %v2785_v37 = vadd.f32 %v2782_v53, %v4259_v45 }
0x19f8   :  { %v2756_v51 = vadd.f32 %v2755_v36, %v2754_v46  ;;  %v2786_v6 = vadd.f32 %v2784_v57, %v4256_v44  ;;  %v2680_v46 = vsel %vm2669_vm6, %v4299_v23, 0.0 }
0x19f9   :  { %v2681_v35 = vadd.f32 %v2680_v46, %v2679_v33 }
0x19fa   :  { %v2757_v59 = vmax.f32 %v2756_v51, 1.0 }
0x19fb   :  { %v2682_v40 = vrot.slane %v2681_v35, 4 }
0x19fc   :  { %3437 = vrcp.f32 %v2757_v59 }
0x19fd   :  { %3439 = vrcp.f32 %v2826_v61  ;;  %v2683_v63 = vadd.f32 %v2682_v40, %v2681_v35 }
0x1a09   :  { %v3438_v44 = vpop.eup %3437 }
0x1a0a   :  { %v3440_v28 = vpop.eup %3439 }
0x1a1b   :  { %v2731_v56 = vpop.xlane.xlu1 %2730 }
0x1a1c   :  { %v2734_v49 = vsub.f32 %v2716_v55, %v2731_v56  ;;  %v2684_v55 = vrot.slane %v2683_v63, 2 }
0x1a1e   :  { %v2736_v60 = vmul.f32 %v4296_v25, %v2734_v49  ;;  %v2685_v58 = vadd.f32 %v2684_v55, %v2683_v63 }
0x1a1f   :  { %v2800_v62 = vpop.xlane.xlu1 %2799 }
0x1a20   :  { %v2739_v2 = vsel %vm2738_vm4, %v2736_v60, 0.0  ;;  %v2803_v39 = vsub.f32 %v2785_v37, %v2800_v62  ;;  %v2686_v49 = vrot.slane %v2685_v58, 1 }
0x1a21   :  { %v2741_v5 = vadd.f32 %v2740_v54, %v2739_v2 }
0x1a22   :  { %v2805_v11 = vmul.f32 %v4296_v25, %v2803_v39 }
0x1a23   :  { %v2742_v7 = vrot.slane %v2741_v5, 4  ;;  %v2802_v8 = vpop.xlane.xlu1 %2801 }
0x1a24   :  { %v2804_v12 = vsub.f32 %v2786_v6, %v2802_v8  ;;  %v2808_v13 = vsel %vm2807_vm5, %v2805_v11, 0.0 }
0x1a25   :  { %v2743_v10 = vadd.f32 %v2742_v7, %v2741_v5 }
0x1a26   :  { %v2806_v45 = vmul.f32 %v4299_v23, %v2804_v12 }
0x1a27   :  { %v2744_v9 = vrot.slane %v2743_v10, 2  ;;  %v2636_v31 = vpop.xlane.xlu1 %2635 }
0x1a28   :  { %v2809_v14 = vsel %vm2807_vm5, %v2806_v45, 0.0  ;;  %3441 = vlog2.f32 %v2636_v31 }
0x1a29   :  { %v2810_v15 = vadd.f32 %v2809_v14, %v2808_v13  ;;  %v2745_v16 = vadd.f32 %v2744_v9, %v2743_v10 }
0x1a2b   :  { %v2811_v18 = vrot.slane %v2810_v15, 4  ;;  %v2746_v20 = vrot.slane %v2745_v16, 1  ;;  %v2638_v32 = vpop.xlane.xlu1 %2637 }
0x1a2c   :  { %3443 = vlog2.f32 %v2638_v32 }
0x1a2d   :  { %v2812_v21 = vadd.f32 %v2811_v18, %v2810_v15  ;;  %v2747_v47 = vadd.f32 %v2746_v20, %v2745_v16 }
0x1a2f   :  { %v2813_v24 = vrot.slane %v2812_v21, 2  ;;  %v2759_v26 = vmul.f32 %v3438_v44, %v2747_v47  ;;  %v2656_v52 = vpop.xlane.xlu1 %2655 }
0x1a31   :  { %v2830_v17 = vmul.f32 0.1, %v2759_v26  ;;  %v2814_v27 = vadd.f32 %v2813_v24, %v2812_v21 }
0x1a33   :  { %2832 = vrot.lane.b32.xlu1 %v2830_v17, %s3477_s18  ;;  %v2815_v22 = vrot.slane %v2814_v27, 1 }
0x1a35   :  { %v2816_v29 = vadd.f32 %v2815_v22, %v2814_v27  ;;  %v3442_v42 = vpop.eup %3441 }
0x1a36   :  { %v2640_v36 = vmul.f32 0.6931472, %v3442_v42 }
0x1a37   :  { %v2828_v19 = vmul.f32 %v3440_v28, %v2816_v29 }
0x1a38   :  { %v2643_v43 = vadd.f32 %v2640_v36, %v4273_v1  ;;  %v2687_v1 = vadd.f32 %v2686_v49, %v2685_v58 }
0x1a39   :  { %v2836_v30 = vmul.f32 0.2, %v2828_v19  ;;  %v3444_v34 = vpop.eup %3443 }
0x1a3a   :  { %v2642_v38 = vmul.f32 0.6931472, %v3444_v34  ;;  %v2665_v53 = vsub.f32 %v2643_v43, %v2656_v52 }
0x1a3b   :  { %2838 = vrot.lane.b32.xlu0 %v2836_v30, %s3478_s27 }
0x1a3c   :  { %v2644_v50 = vadd.f32 %v2642_v38, %v4276_v3  ;;  %v2667_v56 = vmul.f32 %v4296_v25, %v2665_v53  ;;  %v2688_v3 = vmax.f32 %v2687_v1, 1.0 }
0x1a3e   :  { %v2670_v48 = vsel %vm2669_vm6, %v2667_v56, 0.0  ;;  %3445 = vrcp.f32 %v2688_v3 }
0x1a4b   :  { %v3446_v39 = vpop.eup %3445 }
0x1a76   :  { %v2658_v41 = vpop.xlane.xlu0 %2657 }
0x1a77   :  { %v2666_v51 = vsub.f32 %v2644_v50, %v2658_v41 }
0x1a79   :  { %v2668_v4 = vmul.f32 %v4299_v23, %v2666_v51 }
0x1a7b   :  { %v2671_v59 = vsel %vm2669_vm6, %v2668_v4, 0.0 }
0x1a7c   :  { %v2672_v57 = vadd.f32 %v2671_v59, %v2670_v48 }
0x1a7e   :  { %v2673_v60 = vrot.slane %v2672_v57, 4 }
0x1a80   :  { %v2674_v37 = vadd.f32 %v2673_v60, %v2672_v57 }
0x1a82   :  { %v2675_v62 = vrot.slane %v2674_v37, 2 }
0x1a84   :  { %v2676_v0 = vadd.f32 %v2675_v62, %v2674_v37 }
0x1a86   :  { %v2677_v54 = vrot.slane %v2676_v0, 1 }
0x1a88   :  { %v2678_v2 = vadd.f32 %v2677_v54, %v2676_v0 }
0x1a8a   :  { %v2690_v23 = vmul.f32 %v3446_v39, %v2678_v2 }
0x1a8c   :  { %v2829_v25 = vmul.f32 0.7, %v2690_v23 }
0x1aa5   :  { %v2833_v5 = vpop.permute.xlu1 %2832 }
0x1aa6   :  { %v2835_v6 = vadd.f32 %v2833_v5, %v2829_v25 }
0x1aad   :  { %v2839_v7 = vpop.permute.xlu0 %2838 }
0x1aae   :  { %v2841_v8 = vadd.f32 %v2839_v7, %v2835_v6 }
0x1ab0   :  { %2843 = vst.msk [vmem:[#allocation3] sm:$0x1] %vm2842_vm7, %v2841_v8 }
0x1ab1   :  { %3458 = shalt.err (!%p3455_p4)
}
0x1ab2   :  { %2855 = dma.vmem_to_hbm [thread:$0]  %s2853_s30, 16, %s4354_s20, [#allocation4]  }
0x1ab3   :  { %3467 = dma.done.wait [#allocation4], 16  }
0x1ab4   :  { %3468 = vsyncadd [#allocation4], 4294967280 }
0x1ab5   :  { %2861 = vsyncpa [#allocation4], 1 }

</bundles_post_ra>
